<compile_context>
chip_gen: v5e
topology: v5e:2x2
jax: 0.10.0
libtpu: 0.0.40
codegen_flags: <defaults>
</compile_context>

<pallas_src>
import functools
import math

import jax
import jax.numpy as jnp
from jax.experimental import pallas as pl
from jax.experimental.pallas import tpu as pltpu

SQRT_HALF = math.sqrt(0.5)   # sqrt(normalization_constant), constant = 0.5
MASK_NEG = -1e30             # additive padding mask value


def _round_up(v, m):
    return (v + m - 1) // m * m


def attention_layer_kernel(scale_smem, x_ref, tgt_ref, enck_ref, encv_ref,
                           mask_ref, w_in_ref, b_in_ref, w_out_ref, b_out_ref,
                           out_ref, attn_ref, *, mm_dtype):
    Bb, Tt, Cp = x_ref.shape
    Ep = w_in_ref.shape[1]

    x = x_ref[...]                                       # (Bb, Tt, Cp) f32 residual

    # x = (in_projection(x) + target_embedding) * sqrt(0.5)
    # batch folded into the MXU M dimension; operands in mm_dtype, f32 accumulate
    y = jnp.dot(x.reshape(Bb * Tt, Cp).astype(mm_dtype), w_in_ref[...],
                preferred_element_type=jnp.float32) + b_in_ref[...]
    y = (y.reshape(Bb, Tt, Ep) + tgt_ref[...]) * SQRT_HALF

    # attention scores: bmm(y, encoder_out[0]) -> (Bb, Tt, Sp)
    scores = jnp.einsum('bte,bes->bts', y.astype(mm_dtype), enck_ref[...],
                        preferred_element_type=jnp.float32)

    # additive padding mask (padded source lanes carry -1e30) — one VALU add
    scores = scores + mask_ref[...]

    # softmax over the source dim; EUP reciprocal + one Newton refinement
    m = jnp.max(scores, axis=-1, keepdims=True)
    e = jnp.exp(scores - m)
    denom = jnp.maximum(jnp.sum(e, axis=-1, keepdims=True), 1e-30)
    inv = pl.reciprocal(denom, approx=True)
    inv = inv * (2.0 - denom * inv)                      # refine to ~f32 accuracy
    attn = e * inv
    attn_ref[...] = attn.astype(attn_ref.dtype)

    # context: bmm(attn, encoder_out[1]) -> (Bb, Tt, Ep)
    ctx = jnp.einsum('bts,bse->bte', attn.astype(mm_dtype), encv_ref[...],
                     preferred_element_type=jnp.float32)

    # per-batch length normalization  sqrt(src_len), read as SMEM scalars
    b0 = pl.program_id(0) * Bb
    ctx = jnp.stack([ctx[i] * scale_smem[b0 + i] for i in range(Bb)], axis=0)

    # x = (out_projection(ctx) + residual) * sqrt(0.5)
    out = jnp.dot(ctx.reshape(Bb * Tt, Ep).astype(mm_dtype), w_out_ref[...],
                  preferred_element_type=jnp.float32) + b_out_ref[...]
    out = (out.reshape(Bb, Tt, Cp) + x) * SQRT_HALF
    out_ref[...] = out.astype(out_ref.dtype)


def _step_vmem_bytes(bb, tile_t, Cp, Ep, Sp, mm_bytes, kv_buffers):
    """Heuristic per-grid-step VMEM footprint (pipeline buffers + live values)."""
    f32 = 4
    stream_in = 2 * bb * tile_t * (Cp + Ep) * f32            # x, tgt (double-buffered)
    kv = kv_buffers * bb * Ep * Sp * mm_bytes * 2             # enc_k + enc_v
    mask = 2 * bb * 8 * Sp * f32                               # additive mask (sublane-padded)
    weights = 2 * Cp * Ep * mm_bytes + (Ep + Cp) * f32         # single-buffered weights + biases
    outs = 2 * bb * tile_t * (Cp + Sp) * f32                   # out, attn (double-buffered)
    live = bb * tile_t * (3 * Sp + 2 * Ep) * f32               # scores/exp/attn + y + ctx
    return stream_in + kv + mask + weights + outs + live


def attention_layer(x, target_embedding, enc_k, enc_v, pad_mask,
                    w_in, b_in, w_out, b_out, mm_dtype=jnp.bfloat16):
    B, T, C = x.shape
    E = w_in.shape[1]
    S = enc_k.shape[2]
    mm_bytes = jnp.dtype(mm_dtype).itemsize

    # per-batch length normalization: s * rsqrt(s) == sqrt(s); lives in SMEM
    src_len = jnp.float32(S) - jnp.sum(pad_mask.astype(jnp.float32), axis=(1, 2))
    scale = jnp.sqrt(src_len).astype(jnp.float32)               # (B,)
    # TODO(synk): fully-padded source rows yield scale==0 -> zero output here,
    # whereas the PyTorch reference produces NaN (0 * inf) for that degenerate case.

    # lane-dense padded shapes
    Cp = _round_up(C, 128)
    Ep = _round_up(E, 128)
    Sp = _round_up(S, 128)

    # --- generation-aware VMEM / MXU budgets ---
    try:
        vmem_cap = int(pltpu.get_tpu_info().vmem_capacity_bytes)
    except Exception:
        vmem_cap = 64 * 1024 * 1024            # conservative (v7x-sized) fallback
    vmem_budget = int(vmem_cap * 0.6)          # tile-sizing budget (headroom for compiler scratch)
    vmem_limit = int(vmem_cap * 0.8)           # scoped VMEM limit handed to Mosaic
    try:
        kind = jax.devices()[0].device_kind.lower()
    except Exception:
        kind = ""
    is_v5e = ("v5" in kind and "lit" in kind) or "v5e" in kind
    row_target = 256 if is_v5e else 512        # MXU M rows per grid step

    # --- T tile: minimize padding waste subject to the row target ---
    t_min = _round_up(T, 8)
    if t_min <= row_target:
        TILE_T, Tp = t_min, t_min
    else:
        TILE_T, Tp = 64, _round_up(T, 64)
        for tile in range(64, row_target + 1, 8):
            tp = -(-T // tile) * tile
            if (tp, -tile) <= (Tp, -TILE_T):   # smaller padding first, then bigger tile
                TILE_T, Tp = tile, tp

    def fits(bb, tile_t, kvb):
        return _step_vmem_bytes(bb, tile_t, Cp, Ep, Sp, mm_bytes, kvb) <= vmem_budget

    # drop K/V to a single VMEM buffer only when the budget is tight
    kv_buffers = 2 if fits(1, TILE_T, 2) else 1
    # shrink the T tile if a single batch element still does not fit
    while TILE_T > 8 and not fits(1, TILE_T, kv_buffers):
        TILE_T = max(8, _round_up(TILE_T // 2, 8))
        Tp = _round_up(T, TILE_T)
    # TODO(synk): for very long sources (Sp >~ 2048) an S grid axis with online
    # (flash-style) softmax would bound the (Bb, TILE_T, Sp) intermediates.

    # --- batch folding: largest divisor of B that fits row target + VMEM and
    #     keeps >= 2 steps on the batch axis when B >= 2 (v7x megacore). ---
    bb_cap = B // 2 if B >= 2 else 1
    Bb = 1
    for d in range(1, B + 1):
        if B % d or d > bb_cap:
            continue
        if d * TILE_T > max(row_target, TILE_T):
            continue
        if not fits(d, TILE_T, kv_buffers):
            continue
        Bb = d

    # --- pad inputs to TPU-friendly shapes ---
    def pad(a, tgt_shape, value=0.0):
        widths = [(0, t - s) for s, t in zip(a.shape, tgt_shape)]
        return jnp.pad(a, widths, constant_values=value)

    xp = pad(x, (B, Tp, Cp))
    tgtp = pad(target_embedding, (B, Tp, Ep))
    enckp = pad(enc_k, (B, Ep, Sp)).astype(mm_dtype)
    encvp = pad(enc_v, (B, Sp, Ep)).astype(mm_dtype)
    mask_add = jnp.where(pad_mask > 0.0, jnp.float32(MASK_NEG), jnp.float32(0.0))
    maskp = pad(mask_add, (B, 1, Sp), value=MASK_NEG)     # padded S lanes masked out
    w_inp = pad(w_in, (Cp, Ep)).astype(mm_dtype)
    b_inp = pad(b_in, (1, Ep)).astype(jnp.float32)
    w_outp = pad(w_out, (Ep, Cp)).astype(mm_dtype)
    b_outp = pad(b_out, (1, Cp)).astype(jnp.float32)

    grid = (B // Bb, Tp // TILE_T)
    semantics = ("parallel", "arbitrary") if grid[0] >= 2 else ("parallel", "parallel")

    out_shape = (
        jax.ShapeDtypeStruct((B, Tp, Cp), x.dtype),       # projected output
        jax.ShapeDtypeStruct((B, Tp, Sp), x.dtype),       # attn_scores
    )

    kernel = functools.partial(attention_layer_kernel, mm_dtype=mm_dtype)

    def run(use_buffered):
        const_kw, kv_kw = {}, {}
        if use_buffered:
            try:
                buf1 = pl.Buffered(1)
                pl.BlockSpec((8, 128), lambda b, t, s: (0, 0), pipeline_mode=buf1)
                const_kw = dict(pipeline_mode=buf1)       # grid-constant weights/biases
                kv_kw = dict(pipeline_mode=buf1) if kv_buffers == 1 else {}
            except Exception:
                const_kw, kv_kw = {}, {}

        grid_spec = pltpu.PrefetchScalarGridSpec(
            num_scalar_prefetch=1,                        # sqrt(src_len) in SMEM
            grid=grid,
            in_specs=[
                pl.BlockSpec((Bb, TILE_T, Cp), lambda b, t, s: (b, t, 0)),   # x
                pl.BlockSpec((Bb, TILE_T, Ep), lambda b, t, s: (b, t, 0)),   # target_embedding
                pl.BlockSpec((Bb, Ep, Sp), lambda b, t, s: (b, 0, 0), **kv_kw),  # enc keys
                pl.BlockSpec((Bb, Sp, Ep), lambda b, t, s: (b, 0, 0), **kv_kw),  # enc values
                pl.BlockSpec((Bb, 1, Sp), lambda b, t, s: (b, 0, 0)),        # additive mask
                pl.BlockSpec((Cp, Ep), lambda b, t, s: (0, 0), **const_kw),  # w_in
                pl.BlockSpec((1, Ep), lambda b, t, s: (0, 0), **const_kw),   # b_in
                pl.BlockSpec((Ep, Cp), lambda b, t, s: (0, 0), **const_kw),  # w_out
                pl.BlockSpec((1, Cp), lambda b, t, s: (0, 0), **const_kw),   # b_out
            ],
            out_specs=[
                pl.BlockSpec((Bb, TILE_T, Cp), lambda b, t, s: (b, t, 0)),
                pl.BlockSpec((Bb, TILE_T, Sp), lambda b, t, s: (b, t, 0)),
            ],
        )
        out_p, attn_p = pl.pallas_call(
            kernel,
            out_shape=out_shape,
            grid_spec=grid_spec,
            compiler_params=pltpu.CompilerParams(
                dimension_semantics=semantics,
                vmem_limit_bytes=vmem_limit),
        )(scale, xp, tgtp, enckp, encvp, maskp, w_inp, b_inp, w_outp, b_outp)
        return jax.block_until_ready(out_p), jax.block_until_ready(attn_p)

    try:
        out_p, attn_p = run(True)
    except Exception:
        # fall back to default double-buffering if Buffered(1) is unsupported
        out_p, attn_p = run(False)

    return out_p[:, :T, :C], attn_p[:, :T, :S]


def reference(x, tgt, enc_k, enc_v, pad_mask, w_in, b_in, w_out, b_out,
              mm_dtype=jnp.float32):
    """Pure-JAX reference of the PyTorch forward (optionally with bf16 matmul operands)."""
    c = lambda a: a.astype(mm_dtype)
    y = jnp.einsum('btc,ce->bte', c(x), c(w_in),
                   preferred_element_type=jnp.float32) + b_in[0]
    y = (y + tgt) * SQRT_HALF
    scores = jnp.einsum('bte,bes->bts', c(y), c(enc_k),
                        preferred_element_type=jnp.float32)
    scores = jnp.where(pad_mask > 0.0, -jnp.inf, scores)
    attn = jax.nn.softmax(scores, axis=-1)
    ctx = jnp.einsum('bts,bse->bte', c(attn), c(enc_v),
                     preferred_element_type=jnp.float32)
    s = enc_v.shape[1] - jnp.sum(pad_mask, axis=-1, keepdims=True)       # (B,1,1)
    ctx = ctx * (s * jax.lax.rsqrt(s))
    out = jnp.einsum('bte,ec->btc', c(ctx), c(w_out),
                     preferred_element_type=jnp.float32) + b_out[0]
    out = (out + x) * SQRT_HALF
    return out, attn


if __name__ == "__main__":
    # small shapes consistent with the module
    B, T, S = 2, 8, 16          # batch, target length, source length
    C, E = 32, 64               # conv_channels, embed_dim

    key = jax.random.PRNGKey(0)
    k = jax.random.split(key, 8)

    x = jax.random.normal(k[0], (B, T, C), dtype=jnp.float32)
    tgt = jax.random.normal(k[1], (B, T, E), dtype=jnp.float32)
    enc_k = jax.random.normal(k[2], (B, E, S), dtype=jnp.float32)   # encoder_out[0]
    enc_v = jax.random.normal(k[3], (B, S, E), dtype=jnp.float32)   # encoder_out[1]

    # padding mask: last few source positions padded for batch element 1
    pad_mask = jnp.zeros((B, 1, S), dtype=jnp.float32)
    pad_mask = pad_mask.at[1, 0, S - 4:].set(1.0)

    # weight-normalized Linear at init == normal(0, sqrt(1/in_features)) weight, zero bias
    # (weight_norm at construction is the identity reparameterization)
    w_in = jax.random.normal(k[4], (C, E), dtype=jnp.float32) * math.sqrt(1.0 / C)
    b_in = jnp.zeros((1, E), dtype=jnp.float32)
    w_out = jax.random.normal(k[5], (E, C), dtype=jnp.float32) * math.sqrt(1.0 / E)
    b_out = jnp.zeros((1, C), dtype=jnp.float32)

    # 1) exactness check: f32 MXU path vs pure-f32 reference (tight tolerance)
    out32, attn32 = attention_layer(x, tgt, enc_k, enc_v, pad_mask,
                                    w_in, b_in, w_out, b_out,
                                    mm_dtype=jnp.float32)
    ref_out32, ref_attn32 = reference(x, tgt, enc_k, enc_v, pad_mask,
                                      w_in, b_in, w_out, b_out,
                                      mm_dtype=jnp.float32)
    assert jnp.allclose(out32, ref_out32, atol=1e-4, rtol=1e-4)
    assert jnp.allclose(attn32, ref_attn32, atol=1e-4, rtol=1e-4)

    # 2) perf path: bf16 MXU operands vs precision-matched reference
    #    (tolerance covers possible single-ulp bf16 re-quantization flips)
    out16, attn16 = attention_layer(x, tgt, enc_k, enc_v, pad_mask,
                                    w_in, b_in, w_out, b_out,
                                    mm_dtype=jnp.bfloat16)
    ref_out16, ref_attn16 = reference(x, tgt, enc_k, enc_v, pad_mask,
                                      w_in, b_in, w_out, b_out,
                                      mm_dtype=jnp.bfloat16)
    out16 = jax.block_until_ready(out16)
    attn16 = jax.block_until_ready(attn16)
    assert jnp.allclose(out16, ref_out16, atol=3e-2, rtol=3e-2)
    assert jnp.allclose(attn16, ref_attn16, atol=3e-2, rtol=3e-2)

    print("KERNEL_OK")
</pallas_src>

<mosaic_0001>
module attributes {stable_mosaic.version = 11 : i64} {
  func.func @attention_layer_kernel(%arg0: i32, %arg1: i32, %arg2: memref<2xf32, #tpu.memory_space<smem>>, %arg3: memref<1x8x128xf32, #tpu.memory_space<vmem>>, %arg4: memref<1x8x128xf32, #tpu.memory_space<vmem>>, %arg5: memref<1x128x128xf32, #tpu.memory_space<vmem>>, %arg6: memref<1x128x128xf32, #tpu.memory_space<vmem>>, %arg7: memref<1x1x128xf32, #tpu.memory_space<vmem>>, %arg8: memref<128x128xf32, #tpu.memory_space<vmem>>, %arg9: memref<1x128xf32, #tpu.memory_space<vmem>>, %arg10: memref<128x128xf32, #tpu.memory_space<vmem>>, %arg11: memref<1x128xf32, #tpu.memory_space<vmem>>, %arg12: memref<1x8x128xf32, #tpu.memory_space<vmem>>, %arg13: memref<1x8x128xf32, #tpu.memory_space<vmem>>) attributes {dimension_semantics = [#tpu.dimension_semantics<parallel>, #tpu.dimension_semantics<arbitrary>], iteration_bounds = array<i64: 2, 1>, scalar_prefetch = 1 : i64, scratch_operands = 0 : i64, tpu.core_type = #tpu.core_type<tc>, window_params = [{transform_indices = @transform_0, window_bounds = array<i64: 1, 8, 128>}, {transform_indices = @transform_1, window_bounds = array<i64: 1, 8, 128>}, {transform_indices = @transform_2, window_bounds = array<i64: 1, 128, 128>}, {transform_indices = @transform_3, window_bounds = array<i64: 1, 128, 128>}, {transform_indices = @transform_4, window_bounds = array<i64: 1, 1, 128>}, {pipeline_mode = #tpu.pipeline_mode<synchronous>, transform_indices = @transform_5, window_bounds = array<i64: 128, 128>}, {pipeline_mode = #tpu.pipeline_mode<synchronous>, transform_indices = @transform_6, window_bounds = array<i64: 1, 128>}, {pipeline_mode = #tpu.pipeline_mode<synchronous>, transform_indices = @transform_7, window_bounds = array<i64: 128, 128>}, {pipeline_mode = #tpu.pipeline_mode<synchronous>, transform_indices = @transform_8, window_bounds = array<i64: 1, 128>}, {transform_indices = @transform_9, window_bounds = array<i64: 1, 8, 128>}, {transform_indices = @transform_10, window_bounds = array<i64: 1, 8, 128>}]} {
    %c0 = arith.constant 0 : index
    %c0_0 = arith.constant 0 : index
    %c0_1 = arith.constant 0 : index
    %0 = vector.load %arg3[%c0, %c0_0, %c0_1] : memref<1x8x128xf32, #tpu.memory_space<vmem>>, vector<1x8x128xf32>
    %1 = vector.shape_cast %0 : vector<1x8x128xf32> to vector<8x128xf32>
    %c0_2 = arith.constant 0 : index
    %c0_3 = arith.constant 0 : index
    %2 = vector.load %arg8[%c0_2, %c0_3] : memref<128x128xf32, #tpu.memory_space<vmem>>, vector<128x128xf32>
    %cst = arith.constant dense<0.000000e+00> : vector<8x128xf32>
    %3 = tpu.matmul %1, %2, %cst {dimension_numbers = #tpu.dot_dimension_numbers<[1], [0], [0], [1], [0, 0, 1, 1], [], []>} : vector<8x128xf32>, vector<128x128xf32>, vector<8x128xf32> -> vector<8x128xf32>
    %c0_4 = arith.constant 0 : index
    %c0_5 = arith.constant 0 : index
    %4 = vector.load %arg9[%c0_4, %c0_5] : memref<1x128xf32, #tpu.memory_space<vmem>>, vector<1x128xf32>
    %5 = vector.broadcast %4 : vector<1x128xf32> to vector<8x128xf32>
    %6 = arith.addf %3, %5 : vector<8x128xf32>
    %7 = vector.shape_cast %6 : vector<8x128xf32> to vector<1x8x128xf32>
    %c0_6 = arith.constant 0 : index
    %c0_7 = arith.constant 0 : index
    %c0_8 = arith.constant 0 : index
    %8 = vector.load %arg4[%c0_6, %c0_7, %c0_8] : memref<1x8x128xf32, #tpu.memory_space<vmem>>, vector<1x8x128xf32>
    %9 = arith.addf %7, %8 : vector<1x8x128xf32>
    %cst_9 = arith.constant 0.707106769 : f32
    %10 = vector.broadcast %cst_9 : f32 to vector<1x8x128xf32>
    %11 = arith.mulf %9, %10 : vector<1x8x128xf32>
    %c0_10 = arith.constant 0 : index
    %c0_11 = arith.constant 0 : index
    %c0_12 = arith.constant 0 : index
    %12 = vector.load %arg5[%c0_10, %c0_11, %c0_12] : memref<1x128x128xf32, #tpu.memory_space<vmem>>, vector<1x128x128xf32>
    "tpu.trace_start"() <{level = 10 : i32, message = "bte,bes->bts"}> : () -> ()
    %cst_13 = arith.constant dense<0.000000e+00> : vector<1x8x128xf32>
    %13 = tpu.matmul %11, %12, %cst_13 {dimension_numbers = #tpu.dot_dimension_numbers<[2], [1], [1], [2], [0, 0, 0, 1, 1, 2], [0], [0]>} : vector<1x8x128xf32>, vector<1x128x128xf32>, vector<1x8x128xf32> -> vector<1x8x128xf32>
    "tpu.trace_stop"() : () -> ()
    %c0_14 = arith.constant 0 : index
    %c0_15 = arith.constant 0 : index
    %c0_16 = arith.constant 0 : index
    %14 = vector.load %arg7[%c0_14, %c0_15, %c0_16] : memref<1x1x128xf32, #tpu.memory_space<vmem>>, vector<1x1x128xf32>
    %15 = vector.broadcast %14 : vector<1x1x128xf32> to vector<1x8x128xf32>
    %16 = arith.addf %13, %15 : vector<1x8x128xf32>
    %cst_17 = arith.constant dense<0xFF800000> : vector<1x8xf32>
    %17 = vector.multi_reduction <maximumf>, %16, %cst_17 [2] : vector<1x8x128xf32> to vector<1x8xf32>
    %18 = vector.shape_cast %17 : vector<1x8xf32> to vector<1x8x1xf32>
    %19 = vector.broadcast %18 : vector<1x8x1xf32> to vector<1x8x128xf32>
    %20 = arith.subf %16, %19 : vector<1x8x128xf32>
    %21 = math.exp %20 : vector<1x8x128xf32>
    %cst_18 = arith.constant dense<0.000000e+00> : vector<1x8xf32>
    %22 = vector.multi_reduction <add>, %21, %cst_18 [2] : vector<1x8x128xf32> to vector<1x8xf32>
    %23 = vector.shape_cast %22 : vector<1x8xf32> to vector<1x8x1xf32>
    %cst_19 = arith.constant 1.000000e-30 : f32
    %24 = vector.broadcast %cst_19 : f32 to vector<1x8x1xf32>
    %25 = arith.maximumf %23, %24 : vector<1x8x1xf32>
    %26 = tpu.reciprocal %25 {approx = true} : vector<1x8x1xf32> -> vector<1x8x1xf32>
    %27 = arith.mulf %25, %26 : vector<1x8x1xf32>
    %cst_20 = arith.constant 2.000000e+00 : f32
    %28 = vector.broadcast %cst_20 : f32 to vector<1x8x1xf32>
    %29 = arith.subf %28, %27 : vector<1x8x1xf32>
    %30 = arith.mulf %26, %29 : vector<1x8x1xf32>
    %31 = vector.broadcast %30 : vector<1x8x1xf32> to vector<1x8x128xf32>
    %32 = arith.mulf %21, %31 : vector<1x8x128xf32>
    %c0_21 = arith.constant 0 : index
    %c0_22 = arith.constant 0 : index
    %c0_23 = arith.constant 0 : index
    %33 = vector.load %arg13[%c0_21, %c0_22, %c0_23] : memref<1x8x128xf32, #tpu.memory_space<vmem>>, vector<1x8x128xf32>
    tpu.vector_store %arg13[%c0_21, %c0_22, %c0_23], %32 {strides = array<i32>} : memref<1x8x128xf32, #tpu.memory_space<vmem>>, vector<1x8x128xf32>,
    %c0_24 = arith.constant 0 : index
    %c0_25 = arith.constant 0 : index
    %c0_26 = arith.constant 0 : index
    %34 = vector.load %arg6[%c0_24, %c0_25, %c0_26] : memref<1x128x128xf32, #tpu.memory_space<vmem>>, vector<1x128x128xf32>
    "tpu.trace_start"() <{level = 10 : i32, message = "bts,bse->bte"}> : () -> ()
    %cst_27 = arith.constant dense<0.000000e+00> : vector<1x8x128xf32>
    %35 = tpu.matmul %32, %34, %cst_27 {dimension_numbers = #tpu.dot_dimension_numbers<[2], [1], [1], [2], [0, 0, 0, 1, 1, 2], [0], [0]>} : vector<1x8x128xf32>, vector<1x128x128xf32>, vector<1x8x128xf32> -> vector<1x8x128xf32>
    "tpu.trace_stop"() : () -> ()
    %c1_i32 = arith.constant 1 : i32
    %36 = arith.muli %arg0, %c1_i32 : i32
    %37 = vector.shape_cast %35 : vector<1x8x128xf32> to vector<8x128xf32>
    %c0_i32 = arith.constant 0 : i32
    %38 = arith.addi %36, %c0_i32 : i32
    %39 = arith.index_cast %38 : i32 to index
    %40 = memref.load %arg2[%39] : memref<2xf32, #tpu.memory_space<smem>>
    %41 = vector.broadcast %40 : f32 to vector<8x128xf32>
    %42 = arith.mulf %37, %41 : vector<8x128xf32>
    %43 = vector.shape_cast %42 : vector<8x128xf32> to vector<1x8x128xf32>
    %44 = vector.shape_cast %43 : vector<1x8x128xf32> to vector<8x128xf32>
    %c0_28 = arith.constant 0 : index
    %c0_29 = arith.constant 0 : index
    %45 = vector.load %arg10[%c0_28, %c0_29] : memref<128x128xf32, #tpu.memory_space<vmem>>, vector<128x128xf32>
    %cst_30 = arith.constant dense<0.000000e+00> : vector<8x128xf32>
    %46 = tpu.matmul %44, %45, %cst_30 {dimension_numbers = #tpu.dot_dimension_numbers<[1], [0], [0], [1], [0, 0, 1, 1], [], []>} : vector<8x128xf32>, vector<128x128xf32>, vector<8x128xf32> -> vector<8x128xf32>
    %c0_31 = arith.constant 0 : index
    %c0_32 = arith.constant 0 : index
    %47 = vector.load %arg11[%c0_31, %c0_32] : memref<1x128xf32, #tpu.memory_space<vmem>>, vector<1x128xf32>
    %48 = vector.broadcast %47 : vector<1x128xf32> to vector<8x128xf32>
    %49 = arith.addf %46, %48 : vector<8x128xf32>
    %50 = vector.shape_cast %49 : vector<8x128xf32> to vector<1x8x128xf32>
    %51 = arith.addf %50, %0 : vector<1x8x128xf32>
    %cst_33 = arith.constant 0.707106769 : f32
    %52 = vector.broadcast %cst_33 : f32 to vector<1x8x128xf32>
    %53 = arith.mulf %51, %52 : vector<1x8x128xf32>
    %c0_34 = arith.constant 0 : index
    %c0_35 = arith.constant 0 : index
    %c0_36 = arith.constant 0 : index
    %54 = vector.load %arg12[%c0_34, %c0_35, %c0_36] : memref<1x8x128xf32, #tpu.memory_space<vmem>>, vector<1x8x128xf32>
    tpu.vector_store %arg12[%c0_34, %c0_35, %c0_36], %53 {strides = array<i32>} : memref<1x8x128xf32, #tpu.memory_space<vmem>>, vector<1x8x128xf32>,
    return
  }
  func.func @transform_0(%arg0: i32, %arg1: i32, %arg2: memref<2xf32, #tpu.memory_space<smem>>) -> (i32, i32, i32) {
    %c0_i32 = arith.constant 0 : i32
    %c0_i32_0 = arith.constant 0 : i32
    return %arg0, %arg1, %c0_i32 : i32, i32, i32
  }
  func.func @transform_1(%arg0: i32, %arg1: i32, %arg2: memref<2xf32, #tpu.memory_space<smem>>) -> (i32, i32, i32) {
    %c0_i32 = arith.constant 0 : i32
    %c0_i32_0 = arith.constant 0 : i32
    return %arg0, %arg1, %c0_i32 : i32, i32, i32
  }
  func.func @transform_2(%arg0: i32, %arg1: i32, %arg2: memref<2xf32, #tpu.memory_space<smem>>) -> (i32, i32, i32) {
    %c0_i32 = arith.constant 0 : i32
    %c0_i32_0 = arith.constant 0 : i32
    %c0_i32_1 = arith.constant 0 : i32
    return %arg0, %c0_i32, %c0_i32_0 : i32, i32, i32
  }
  func.func @transform_3(%arg0: i32, %arg1: i32, %arg2: memref<2xf32, #tpu.memory_space<smem>>) -> (i32, i32, i32) {
    %c0_i32 = arith.constant 0 : i32
    %c0_i32_0 = arith.constant 0 : i32
    %c0_i32_1 = arith.constant 0 : i32
    return %arg0, %c0_i32, %c0_i32_0 : i32, i32, i32
  }
  func.func @transform_4(%arg0: i32, %arg1: i32, %arg2: memref<2xf32, #tpu.memory_space<smem>>) -> (i32, i32, i32) {
    %c0_i32 = arith.constant 0 : i32
    %c0_i32_0 = arith.constant 0 : i32
    %c0_i32_1 = arith.constant 0 : i32
    return %arg0, %c0_i32, %c0_i32_0 : i32, i32, i32
  }
  func.func @transform_5(%arg0: i32, %arg1: i32, %arg2: memref<2xf32, #tpu.memory_space<smem>>) -> (i32, i32) {
    %c0_i32 = arith.constant 0 : i32
    %c0_i32_0 = arith.constant 0 : i32
    %c0_i32_1 = arith.constant 0 : i32
    return %c0_i32, %c0_i32_0 : i32, i32
  }
  func.func @transform_6(%arg0: i32, %arg1: i32, %arg2: memref<2xf32, #tpu.memory_space<smem>>) -> (i32, i32) {
    %c0_i32 = arith.constant 0 : i32
    %c0_i32_0 = arith.constant 0 : i32
    %c0_i32_1 = arith.constant 0 : i32
    return %c0_i32, %c0_i32_0 : i32, i32
  }
  func.func @transform_7(%arg0: i32, %arg1: i32, %arg2: memref<2xf32, #tpu.memory_space<smem>>) -> (i32, i32) {
    %c0_i32 = arith.constant 0 : i32
    %c0_i32_0 = arith.constant 0 : i32
    %c0_i32_1 = arith.constant 0 : i32
    return %c0_i32, %c0_i32_0 : i32, i32
  }
  func.func @transform_8(%arg0: i32, %arg1: i32, %arg2: memref<2xf32, #tpu.memory_space<smem>>) -> (i32, i32) {
    %c0_i32 = arith.constant 0 : i32
    %c0_i32_0 = arith.constant 0 : i32
    %c0_i32_1 = arith.constant 0 : i32
    return %c0_i32, %c0_i32_0 : i32, i32
  }
  func.func @transform_9(%arg0: i32, %arg1: i32, %arg2: memref<2xf32, #tpu.memory_space<smem>>) -> (i32, i32, i32) {
    %c0_i32 = arith.constant 0 : i32
    %c0_i32_0 = arith.constant 0 : i32
    return %arg0, %arg1, %c0_i32 : i32, i32, i32
  }
  func.func @transform_10(%arg0: i32, %arg1: i32, %arg2: memref<2xf32, #tpu.memory_space<smem>>) -> (i32, i32, i32) {
    %c0_i32 = arith.constant 0 : i32
    %c0_i32_0 = arith.constant 0 : i32
    return %arg0, %arg1, %c0_i32 : i32, i32, i32
  }
}

module attributes {stable_mosaic.version = 11 : i64} {
  func.func @attention_layer_kernel(%arg0: i32, %arg1: i32, %arg2: memref<2xf32, #tpu.memory_space<smem>>, %arg3: memref<1x8x128xf32, #tpu.memory_space<vmem>>, %arg4: memref<1x8x128xf32, #tpu.memory_space<vmem>>, %arg5: memref<1x128x128xf32, #tpu.memory_space<vmem>>, %arg6: memref<1x128x128xf32, #tpu.memory_space<vmem>>, %arg7: memref<1x1x128xf32, #tpu.memory_space<vmem>>, %arg8: memref<128x128xf32, #tpu.memory_space<vmem>>, %arg9: memref<1x128xf32, #tpu.memory_space<vmem>>, %arg10: memref<128x128xf32, #tpu.memory_space<vmem>>, %arg11: memref<1x128xf32, #tpu.memory_space<vmem>>, %arg12: memref<1x8x128xf32, #tpu.memory_space<vmem>>, %arg13: memref<1x8x128xf32, #tpu.memory_space<vmem>>) attributes {dimension_semantics = [#tpu.dimension_semantics<parallel>, #tpu.dimension_semantics<arbitrary>], iteration_bounds = array<i64: 2, 1>, scalar_prefetch = 1 : i64, scratch_operands = 0 : i64, tpu.core_type = #tpu.core_type<tc>, window_params = [{transform_indices = @transform_0, window_bounds = array<i64: 1, 8, 128>}, {transform_indices = @transform_1, window_bounds = array<i64: 1, 8, 128>}, {transform_indices = @transform_2, window_bounds = array<i64: 1, 128, 128>}, {transform_indices = @transform_3, window_bounds = array<i64: 1, 128, 128>}, {transform_indices = @transform_4, window_bounds = array<i64: 1, 1, 128>}, {pipeline_mode = #tpu.pipeline_mode<synchronous>, transform_indices = @transform_5, window_bounds = array<i64: 128, 128>}, {pipeline_mode = #tpu.pipeline_mode<synchronous>, transform_indices = @transform_6, window_bounds = array<i64: 1, 128>}, {pipeline_mode = #tpu.pipeline_mode<synchronous>, transform_indices = @transform_7, window_bounds = array<i64: 128, 128>}, {pipeline_mode = #tpu.pipeline_mode<synchronous>, transform_indices = @transform_8, window_bounds = array<i64: 1, 128>}, {transform_indices = @transform_9, window_bounds = array<i64: 1, 8, 128>}, {transform_indices = @transform_10, window_bounds = array<i64: 1, 8, 128>}]} {
    %c0 = arith.constant 0 : index
    %c0_0 = arith.constant 0 : index
    %c0_1 = arith.constant 0 : index
    %0 = vector.load %arg3[%c0, %c0_0, %c0_1] : memref<1x8x128xf32, #tpu.memory_space<vmem>>, vector<1x8x128xf32>
    %1 = vector.shape_cast %0 : vector<1x8x128xf32> to vector<8x128xf32>
    %c0_2 = arith.constant 0 : index
    %c0_3 = arith.constant 0 : index
    %2 = vector.load %arg8[%c0_2, %c0_3] : memref<128x128xf32, #tpu.memory_space<vmem>>, vector<128x128xf32>
    %cst = arith.constant dense<0.000000e+00> : vector<8x128xf32>
    %3 = tpu.matmul %1, %2, %cst {dimension_numbers = #tpu.dot_dimension_numbers<[1], [0], [0], [1], [0, 0, 1, 1], [], []>} : vector<8x128xf32>, vector<128x128xf32>, vector<8x128xf32> -> vector<8x128xf32>
    %c0_4 = arith.constant 0 : index
    %c0_5 = arith.constant 0 : index
    %4 = vector.load %arg9[%c0_4, %c0_5] : memref<1x128xf32, #tpu.memory_space<vmem>>, vector<1x128xf32>
    %5 = vector.broadcast %4 : vector<1x128xf32> to vector<8x128xf32>
    %6 = arith.addf %3, %5 : vector<8x128xf32>
    %7 = vector.shape_cast %6 : vector<8x128xf32> to vector<1x8x128xf32>
    %c0_6 = arith.constant 0 : index
    %c0_7 = arith.constant 0 : index
    %c0_8 = arith.constant 0 : index
    %8 = vector.load %arg4[%c0_6, %c0_7, %c0_8] : memref<1x8x128xf32, #tpu.memory_space<vmem>>, vector<1x8x128xf32>
    %9 = arith.addf %7, %8 : vector<1x8x128xf32>
    %cst_9 = arith.constant 0.707106769 : f32
    %10 = vector.broadcast %cst_9 : f32 to vector<1x8x128xf32>
    %11 = arith.mulf %9, %10 : vector<1x8x128xf32>
    %c0_10 = arith.constant 0 : index
    %c0_11 = arith.constant 0 : index
    %c0_12 = arith.constant 0 : index
    %12 = vector.load %arg5[%c0_10, %c0_11, %c0_12] : memref<1x128x128xf32, #tpu.memory_space<vmem>>, vector<1x128x128xf32>
    "tpu.trace_start"() <{level = 10 : i32, message = "bte,bes->bts"}> : () -> ()
    %cst_13 = arith.constant dense<0.000000e+00> : vector<1x8x128xf32>
    %13 = tpu.matmul %11, %12, %cst_13 {dimension_numbers = #tpu.dot_dimension_numbers<[2], [1], [1], [2], [0, 0, 0, 1, 1, 2], [0], [0]>} : vector<1x8x128xf32>, vector<1x128x128xf32>, vector<1x8x128xf32> -> vector<1x8x128xf32>
    "tpu.trace_stop"() : () -> ()
    %c0_14 = arith.constant 0 : index
    %c0_15 = arith.constant 0 : index
    %c0_16 = arith.constant 0 : index
    %14 = vector.load %arg7[%c0_14, %c0_15, %c0_16] : memref<1x1x128xf32, #tpu.memory_space<vmem>>, vector<1x1x128xf32>
    %15 = vector.broadcast %14 : vector<1x1x128xf32> to vector<1x8x128xf32>
    %16 = arith.addf %13, %15 : vector<1x8x128xf32>
    %cst_17 = arith.constant dense<0xFF800000> : vector<1x8xf32>
    %17 = vector.multi_reduction <maximumf>, %16, %cst_17 [2] : vector<1x8x128xf32> to vector<1x8xf32>
    %18 = vector.shape_cast %17 : vector<1x8xf32> to vector<1x8x1xf32>
    %19 = vector.broadcast %18 : vector<1x8x1xf32> to vector<1x8x128xf32>
    %20 = arith.subf %16, %19 : vector<1x8x128xf32>
    %21 = math.exp %20 : vector<1x8x128xf32>
    %cst_18 = arith.constant dense<0.000000e+00> : vector<1x8xf32>
    %22 = vector.multi_reduction <add>, %21, %cst_18 [2] : vector<1x8x128xf32> to vector<1x8xf32>
    %23 = vector.shape_cast %22 : vector<1x8xf32> to vector<1x8x1xf32>
    %cst_19 = arith.constant 1.000000e-30 : f32
    %24 = vector.broadcast %cst_19 : f32 to vector<1x8x1xf32>
    %25 = arith.maximumf %23, %24 : vector<1x8x1xf32>
    %26 = tpu.reciprocal %25 {approx = true} : vector<1x8x1xf32> -> vector<1x8x1xf32>
    %27 = arith.mulf %25, %26 : vector<1x8x1xf32>
    %cst_20 = arith.constant 2.000000e+00 : f32
    %28 = vector.broadcast %cst_20 : f32 to vector<1x8x1xf32>
    %29 = arith.subf %28, %27 : vector<1x8x1xf32>
    %30 = arith.mulf %26, %29 : vector<1x8x1xf32>
    %31 = vector.broadcast %30 : vector<1x8x1xf32> to vector<1x8x128xf32>
    %32 = arith.mulf %21, %31 : vector<1x8x128xf32>
    %c0_21 = arith.constant 0 : index
    %c0_22 = arith.constant 0 : index
    %c0_23 = arith.constant 0 : index
    %33 = vector.load %arg13[%c0_21, %c0_22, %c0_23] : memref<1x8x128xf32, #tpu.memory_space<vmem>>, vector<1x8x128xf32>
    tpu.vector_store %arg13[%c0_21, %c0_22, %c0_23], %32 {strides = array<i32>} : memref<1x8x128xf32, #tpu.memory_space<vmem>>, vector<1x8x128xf32>,
    %c0_24 = arith.constant 0 : index
    %c0_25 = arith.constant 0 : index
    %c0_26 = arith.constant 0 : index
    %34 = vector.load %arg6[%c0_24, %c0_25, %c0_26] : memref<1x128x128xf32, #tpu.memory_space<vmem>>, vector<1x128x128xf32>
    "tpu.trace_start"() <{level = 10 : i32, message = "bts,bse->bte"}> : () -> ()
    %cst_27 = arith.constant dense<0.000000e+00> : vector<1x8x128xf32>
    %35 = tpu.matmul %32, %34, %cst_27 {dimension_numbers = #tpu.dot_dimension_numbers<[2], [1], [1], [2], [0, 0, 0, 1, 1, 2], [0], [0]>} : vector<1x8x128xf32>, vector<1x128x128xf32>, vector<1x8x128xf32> -> vector<1x8x128xf32>
    "tpu.trace_stop"() : () -> ()
    %c1_i32 = arith.constant 1 : i32
    %36 = arith.muli %arg0, %c1_i32 : i32
    %37 = vector.shape_cast %35 : vector<1x8x128xf32> to vector<8x128xf32>
    %c0_i32 = arith.constant 0 : i32
    %38 = arith.addi %36, %c0_i32 : i32
    %39 = arith.index_cast %38 : i32 to index
    %40 = memref.load %arg2[%39] : memref<2xf32, #tpu.memory_space<smem>>
    %41 = vector.broadcast %40 : f32 to vector<8x128xf32>
    %42 = arith.mulf %37, %41 : vector<8x128xf32>
    %43 = vector.shape_cast %42 : vector<8x128xf32> to vector<1x8x128xf32>
    %44 = vector.shape_cast %43 : vector<1x8x128xf32> to vector<8x128xf32>
    %c0_28 = arith.constant 0 : index
    %c0_29 = arith.constant 0 : index
    %45 = vector.load %arg10[%c0_28, %c0_29] : memref<128x128xf32, #tpu.memory_space<vmem>>, vector<128x128xf32>
    %cst_30 = arith.constant dense<0.000000e+00> : vector<8x128xf32>
    %46 = tpu.matmul %44, %45, %cst_30 {dimension_numbers = #tpu.dot_dimension_numbers<[1], [0], [0], [1], [0, 0, 1, 1], [], []>} : vector<8x128xf32>, vector<128x128xf32>, vector<8x128xf32> -> vector<8x128xf32>
    %c0_31 = arith.constant 0 : index
    %c0_32 = arith.constant 0 : index
    %47 = vector.load %arg11[%c0_31, %c0_32] : memref<1x128xf32, #tpu.memory_space<vmem>>, vector<1x128xf32>
    %48 = vector.broadcast %47 : vector<1x128xf32> to vector<8x128xf32>
    %49 = arith.addf %46, %48 : vector<8x128xf32>
    %50 = vector.shape_cast %49 : vector<8x128xf32> to vector<1x8x128xf32>
    %51 = arith.addf %50, %0 : vector<1x8x128xf32>
    %cst_33 = arith.constant 0.707106769 : f32
    %52 = vector.broadcast %cst_33 : f32 to vector<1x8x128xf32>
    %53 = arith.mulf %51, %52 : vector<1x8x128xf32>
    %c0_34 = arith.constant 0 : index
    %c0_35 = arith.constant 0 : index
    %c0_36 = arith.constant 0 : index
    %54 = vector.load %arg12[%c0_34, %c0_35, %c0_36] : memref<1x8x128xf32, #tpu.memory_space<vmem>>, vector<1x8x128xf32>
    tpu.vector_store %arg12[%c0_34, %c0_35, %c0_36], %53 {strides = array<i32>} : memref<1x8x128xf32, #tpu.memory_space<vmem>>, vector<1x8x128xf32>,
    return
  }
  func.func @transform_0(%arg0: i32, %arg1: i32, %arg2: memref<2xf32, #tpu.memory_space<smem>>) -> (i32, i32, i32) {
    %c0_i32 = arith.constant 0 : i32
    %c0_i32_0 = arith.constant 0 : i32
    return %arg0, %arg1, %c0_i32 : i32, i32, i32
  }
  func.func @transform_1(%arg0: i32, %arg1: i32, %arg2: memref<2xf32, #tpu.memory_space<smem>>) -> (i32, i32, i32) {
    %c0_i32 = arith.constant 0 : i32
    %c0_i32_0 = arith.constant 0 : i32
    return %arg0, %arg1, %c0_i32 : i32, i32, i32
  }
  func.func @transform_2(%arg0: i32, %arg1: i32, %arg2: memref<2xf32, #tpu.memory_space<smem>>) -> (i32, i32, i32) {
    %c0_i32 = arith.constant 0 : i32
    %c0_i32_0 = arith.constant 0 : i32
    %c0_i32_1 = arith.constant 0 : i32
    return %arg0, %c0_i32, %c0_i32_0 : i32, i32, i32
  }
  func.func @transform_3(%arg0: i32, %arg1: i32, %arg2: memref<2xf32, #tpu.memory_space<smem>>) -> (i32, i32, i32) {
    %c0_i32 = arith.constant 0 : i32
    %c0_i32_0 = arith.constant 0 : i32
    %c0_i32_1 = arith.constant 0 : i32
    return %arg0, %c0_i32, %c0_i32_0 : i32, i32, i32
  }
  func.func @transform_4(%arg0: i32, %arg1: i32, %arg2: memref<2xf32, #tpu.memory_space<smem>>) -> (i32, i32, i32) {
    %c0_i32 = arith.constant 0 : i32
    %c0_i32_0 = arith.constant 0 : i32
    %c0_i32_1 = arith.constant 0 : i32
    return %arg0, %c0_i32, %c0_i32_0 : i32, i32, i32
  }
  func.func @transform_5(%arg0: i32, %arg1: i32, %arg2: memref<2xf32, #tpu.memory_space<smem>>) -> (i32, i32) {
    %c0_i32 = arith.constant 0 : i32
    %c0_i32_0 = arith.constant 0 : i32
    %c0_i32_1 = arith.constant 0 : i32
    return %c0_i32, %c0_i32_0 : i32, i32
  }
  func.func @transform_6(%arg0: i32, %arg1: i32, %arg2: memref<2xf32, #tpu.memory_space<smem>>) -> (i32, i32) {
    %c0_i32 = arith.constant 0 : i32
    %c0_i32_0 = arith.constant 0 : i32
    %c0_i32_1 = arith.constant 0 : i32
    return %c0_i32, %c0_i32_0 : i32, i32
  }
  func.func @transform_7(%arg0: i32, %arg1: i32, %arg2: memref<2xf32, #tpu.memory_space<smem>>) -> (i32, i32) {
    %c0_i32 = arith.constant 0 : i32
    %c0_i32_0 = arith.constant 0 : i32
    %c0_i32_1 = arith.constant 0 : i32
    return %c0_i32, %c0_i32_0 : i32, i32
  }
  func.func @transform_8(%arg0: i32, %arg1: i32, %arg2: memref<2xf32, #tpu.memory_space<smem>>) -> (i32, i32) {
    %c0_i32 = arith.constant 0 : i32
    %c0_i32_0 = arith.constant 0 : i32
    %c0_i32_1 = arith.constant 0 : i32
    return %c0_i32, %c0_i32_0 : i32, i32
  }
  func.func @transform_9(%arg0: i32, %arg1: i32, %arg2: memref<2xf32, #tpu.memory_space<smem>>) -> (i32, i32, i32) {
    %c0_i32 = arith.constant 0 : i32
    %c0_i32_0 = arith.constant 0 : i32
    return %arg0, %arg1, %c0_i32 : i32, i32, i32
  }
  func.func @transform_10(%arg0: i32, %arg1: i32, %arg2: memref<2xf32, #tpu.memory_space<smem>>) -> (i32, i32, i32) {
    %c0_i32 = arith.constant 0 : i32
    %c0_i32_0 = arith.constant 0 : i32
    return %arg0, %arg1, %c0_i32 : i32, i32, i32
  }
}

</mosaic_0001>

<bundles_post_ra>
// kernel: tpu_custom_call.1
= control target key start
LH: loop header
LB: loop body
LE: loop exit
PB: predicated region body
PF: predicated region fallthrough
CT: control target
= control target key end

     0   :  { %s1484_s20 = smov [#allocation3]   ;;  %s1848_s0 = inlined_call_operand.hbm [shape: f32[2], index: 0, kind: input, shape index: {}]   ;;  %s1849_s1 = inlined_call_operand.hbm [shape: f32[2,8,128], index: 1, kind: input, shape index: {}]   ;;  %s1850_s2 = inlined_call_operand.hbm [shape: f32[2,8,128], index: 2, kind: input, shape index: {}]   ;;  %s1851_s3 = inlined_call_operand.hbm [shape: f32[2,128,128], index: 3, kind: input, shape index: {}]   ;;  %s1852_s4 = inlined_call_operand.hbm [shape: f32[2,128,128], index: 4, kind: input, shape index: {}]   ;;  %s1853_s5 = inlined_call_operand.vmem [shape: f32[2,1,128], index: 5, kind: input, shape index: {}]   ;;  %s1854_s6 = inlined_call_operand.hbm [shape: f32[128,128], index: 6, kind: input, shape index: {}]   ;;  %s1855_s7 = inlined_call_operand.vmem [shape: f32[1,128], index: 7, kind: input, shape index: {}]   ;;  %s1856_s8 = inlined_call_operand.hbm [shape: f32[128,128], index: 8, kind: input, shape index: {}]   ;;  %s1857_s9 = inlined_call_operand.vmem [shape: f32[1,128], index: 9, kind: input, shape index: {}]   ;;  %s1858_s10 = inlined_call_operand.hbm [shape: f32[2,8,128], index: 10, kind: output, shape index: {0}]   ;;  %s1859_s11 = inlined_call_operand.hbm [shape: f32[2,8,128], index: 11, kind: output, shape index: {1}]  }
   0x1   :  { %1877 = sst [smem:[#allocation34_spill]] %s1850_s2  ;;  %s18_s19 = sshll.u32 %s1848_s0, 4  ;;  %s19_s19 = int_to_ptr.hbm [resolvable:$true] %s18_s19 }
   0x2   :  { %1878 = sst [smem:[#allocation35_spill]] %s1853_s5 }
   0x3   :  { %1879 = sst [smem:[#allocation36_spill]] %s1854_s6 }
   0x4   :  { %1880 = sst [smem:[#allocation37_spill]] %s1855_s7 }
   0x5   :  { %1881 = sst [smem:[#allocation38_spill]] %s1856_s8 }
   0x6   :  { %1882 = sst [smem:[#allocation39_spill]] %s1857_s9 }
   0x7   :  { %1883 = sst [smem:[#allocation40_spill]] %s1858_s10 }
   0x8   :  { %1884 = sst [smem:[#allocation41_spill]] %s1859_s11 }
   0x9   :  { %21 = dma.hbm_to_smem %s19_s19, 16, %s1484_s20, [#allocation2] }
   0xa   :  { %1430 = dma.done.wait [#allocation2], 16 }
   0xb   :  { %1431 = vsyncadd [#allocation2], 4294967280 }
   0xc   :  { %24 = sfence }
   0xd   :  { %25 = vsyncpa [#allocation5], 0 }
   0xe   :  { %27 = vsyncpa [#allocation5 + $0x1], 0 }
   0xf   :  { %28 = vsyncpa [#allocation8], 0 }
  0x10   :  { %30 = vsyncpa [#allocation8 + $0x1], 0 }
  0x11   :  { %31 = vsyncpa [#allocation11], 0 }
  0x12   :  { %33 = vsyncpa [#allocation11 + $0x1], 0 }
  0x13   :  { %34 = vsyncpa [#allocation14], 0 }
  0x14   :  { %35 = vsyncpa [#allocation6], 0 }
  0x15   :  { %37 = vsyncpa [#allocation6 + $0x1], 0 }
  0x16   :  { %38 = vsyncpa [#allocation17], 0 }
  0x17   :  { %40 = vsyncpa [#allocation17 + $0x1], 0  ;;  %s1552_s21 = smov 0   ;;  %s1554_s0 = smov 0  }
  0x18   :  { %s1556_s22 = smov 0   ;;  %s1558_s23 = smov 0  }
  0x19   :  { %s1560_s24 = smov 0   ;;  %s1562_s25 = smov 0  }
  0x1a LB: > { %1885 = sst [smem:[#allocation26_spill]] %s1462_s21  ;;  %s1583_s26 = sadd.s32 4294967295, %s1482_s25   ;;  %s1482_s25 = sphi %s1562_s25, %s46_s25   ;;  %s1478_s24 = sphi %s1560_s24, %s1920_s24   ;;  %s1474_s23 = sphi %s1558_s23, %s1919_s23   ;;  %s1470_s22 = sphi %s1556_s22, %s1918_s22   ;;  %s1466_s0 = sphi %s1554_s0, %s1922_s0   ;;  %s1462_s21 = sphi %s1552_s21, %s1921_s21  }
  0x1b   : > { %1886 = sst [smem:[#allocation27_spill]] %s1470_s22  ;;  %s1013_s27 = sadd.s32 4294967294, %s1482_s25  }
  0x1c   : > { %1887 = sst [smem:[#allocation28_spill]] %s1474_s23  ;;  %p80_p0 = scmp.ne.s32.totalorder %s1466_s0, %s1462_s21 }
  0x1d   : > { %1888 = sst [smem:[#allocation29_spill]] %s1478_s24  ;;  %p81_p1 = scmp.eq.s32.totalorder %s1583_s26, 0 }
  0x1e   : > { %p296_p2 = scmp.eq.s32.totalorder %s1583_s26, 1  ;;  %p302_p3 = scmp.eq.s32.totalorder %s1013_s27, 1 }
  0x1f   : > { %p1592_p4 = por %p81_p1, %p80_p0  ;;  %p1014_p5 = scmp.ge.s32.totalorder %s1482_s25, 1 }
  0x20   : > { %p1597_p6 = por %p302_p3, %p80_p0  ;;  %p337_p7 = scmp.lt.s32.totalorder %s1482_s25, 3 }
  0x21   : > { %s1892_s6 = sld [smem:[#allocation36_spill]]  ;;  %s1485_s15 = smov [#allocation12]  }
  0x22   : > { %s1890_s29 = scalar_select %p1597_p6, 1, 0 }
  0x23   : > { %p1605_p8 = pnand %p1014_p5, %p337_p7  ;;  %s350_s16 = sshll.u32 %s1485_s15, 4  ;;  %s351_s16 = int_to_ptr.vmem [resolvable:$true] %s350_s16 }
  0x24   : > { %1891 = sst [smem:[#allocation30_spill]] %s1890_s29  ;;  %p1017_p11 = scmp.ge.s32.totalorder %s1482_s25, 2 }
  0x25   : > { %p1065_p9 = pneg %p1605_p8  ;;  %s1860_s18 = smov 128  }
  0x26   : > { %s1862_s19 = smov 8   ;;  %s58_s20 = sadd.s32 1, %s1478_s24 }
  0x27   : > { %s348_s13 = sshll.u32 %s1892_s6, 4  ;;  %p1613_p10 = pnand %p1065_p9, %p81_p1  ;;  %s349_s13 = int_to_ptr.hbm [resolvable:$true] %s348_s13 }
  0x28   : > { %p60_p12 = scmp.ge.s32.totalorder %s58_s20, 2  ;;  %s67_s27 = sadd.s32 1, %s1470_s22 }
  0x29   : > { %1068 = dma.hbm_to_vmem [thread:$0]  (!%p1613_p10), %s349_s13, 2048, %s351_s16, [#allocation11], %s1860_s18, %s1860_s18, %s1862_s19  }
  0x2a   : > { %p74_p13 = scmp.ne.s32.totalorder %s1470_s22, %s1466_s0  ;;  %p75_p0 = scmp.eq.s32.totalorder %s1482_s25, 0 }
  0x2b   : > { %s1924_s20 = smov (%p60_p12, %s58_s20), 0  ;;  %p1094_p7 = scmp.lt.s32.totalorder %s1482_s25, 2 }
  0x2c   : > { %1895 = sst [smem:[#allocation31_spill]] %s1924_s20  ;;  %p76_p3 = por %p75_p0, %p74_p13 }
  0x2d   : > { %p1632_p5 = por %p296_p2, %p74_p13  ;;  %s62_s12 = ssub.s32 %s1478_s24, %s1924_s20 }
  0x2e   : > { %p65_p9 = scmp.eq.s32.totalorder %s62_s12, 0  ;;  %s1640_s13 = sand.u32 1, %s1470_s22  }
  0x2f   : > { %s1896_s30 = scalar_select %p1632_p5, 1, 0 }
  0x30   : > { %s1870_s15 = sshll.u32 %s1640_s13, 3  ;;  %s1872_s16 = sshll.u32 %s1478_s24, 3 }
  0x31   : > { %1897 = sst [smem:[#allocation32_spill]] %s1896_s30  ;;  %p1647_p12 = pnand %p1094_p7, %p76_p3 }
  0x32   : > { %s1645_s18 = scalar_select %p65_p9, %s1470_s22, %s67_s27  }
  0x33   : > { %s1871_s6 = sand.u32 1, %s1482_s25   ;;  %s1900_s2 = sld [smem:[#allocation34_spill]] }
  0x34   : > { %1898 = sst [smem:[#allocation33_spill]] %s1645_s18  ;;  %s408_s10 = scalar_lea.vmem [#allocation7], %s1870_s15 }
  0x35   : > { %s417_s9 = sshll.u32 %s408_s10, 4  ;;  %s1661_s27 = scalar_lea.sflag [#allocation8], %s1871_s6  ;;  %s418_s9 = int_to_ptr.vmem [resolvable:$true] %s417_s9 }
  0x36   : > { %s1022_s18 = sshll.u32 %s1640_s13, 7  ;;  %s1043_s22 = sshll.u32 %s1478_s24, 7 }
  0x37   : > { %s428_s11 = scalar_lea.vmem [#allocation9], %s1022_s18  ;;  %s450_s20 = scalar_lea.vmem [#allocation10], %s1022_s18 }
  0x38   : > { %s436_s29 = sshll.u32 %s428_s11, 4  ;;  %s1901_s8 = sld [smem:[#allocation38_spill]]  ;;  %s437_s29 = int_to_ptr.vmem [resolvable:$true] %s436_s29 }
  0x39   : > { %s413_s12 = scalar_lea.hbm %s1900_s2, %s1872_s16  ;;  %s1488_s16 = smov [#allocation13]  }
  0x3a   : > { %s415_s21 = sshll.u32 %s413_s12, 4  ;;  %s458_s12 = sshll.u32 %s450_s20, 4  ;;  %s416_s21 = int_to_ptr.hbm [resolvable:$true] %s415_s21  ;;  %s459_s12 = int_to_ptr.vmem [resolvable:$true] %s458_s12 }
  0x3b   : > { %1078 = dma.hbm_to_vmem [thread:$0]  (!%p1647_p12), %s416_s21, 128, %s418_s9, %s1661_s27  }
  0x3c   : > { %s367_s2 = sshll.u32 %s1488_s16, 4  ;;  %s1902_s9 = smov 8   ;;  %s368_s2 = int_to_ptr.vmem [resolvable:$true] %s367_s2 }
  0x3d   : > { %s1903_s21 = smov 128   ;;  %s1904_s11 = sshll.u32 %s1478_s24, 3 }
  0x3e   : > { %s365_s6 = sshll.u32 %s1901_s8, 4  ;;  %s393_s30 = scalar_lea.hbm %s1849_s1, %s1904_s11  ;;  %s366_s6 = int_to_ptr.hbm [resolvable:$true] %s365_s6 }
  0x3f   : > { %1071 = dma.hbm_to_vmem [thread:$0]  (!%p1613_p10), %s366_s6, 2048, %s368_s2, [#allocation14], %s1903_s21, %s1903_s21, %s1902_s9  }
  0x40   : > { %s1905_s7 = sshll.u32 %s1640_s13, 3  ;;  %s395_s8 = sshll.u32 %s393_s30, 4  ;;  %s396_s8 = int_to_ptr.hbm [resolvable:$true] %s395_s8 }
  0x41   : > { %s388_s15 = scalar_lea.vmem [#allocation4], %s1905_s7  ;;  %s433_s17 = scalar_lea.hbm %s1851_s3, %s1043_s22 }
  0x42   : > { %s397_s10 = sshll.u32 %s388_s15, 4  ;;  %s385_s23 = scalar_lea.sflag [#allocation5], %s1640_s13  ;;  %s398_s10 = int_to_ptr.vmem [resolvable:$true] %s397_s10 }
  0x43   : > { %1075 = dma.hbm_to_vmem [thread:$0]  (!%p1647_p12), %s396_s8, 128, %s398_s10, %s385_s23  }
  0x44   : > { %s434_s2 = sshll.u32 %s433_s17, 4  ;;  %s455_s18 = scalar_lea.hbm %s1852_s4, %s1043_s22  ;;  %s435_s2 = int_to_ptr.hbm [resolvable:$true] %s434_s2 }
  0x45   : > { %s456_s11 = sshll.u32 %s455_s18, 4  ;;  %s1906_s7 = sand.u32 1, %s1482_s25   ;;  %s457_s11 = int_to_ptr.hbm [resolvable:$true] %s456_s11 }
  0x46   : > { %1081 = dma.hbm_to_vmem [thread:$0]  (!%p1647_p12), %s435_s2, 2048, %s437_s29, %s1661_s27, %s1903_s21, %s1903_s21, %s1902_s9  }
  0x47   : > { %s447_s30 = scalar_lea.sflag [#allocation11], %s1906_s7  ;;  %476 = sbr.rel (%p1605_p8) target bundleno = 914 (0x392), region = 56 }
  0x48   : > { %1084 = dma.hbm_to_vmem [thread:$0]  (!%p1647_p12), %s457_s11, 2048, %s459_s12, %s447_s30, %s1903_s21, %s1903_s21, %s1902_s9  }
  0x49   : > { %s1708_s5 = sand.u32 (!%p1605_p8), 1, %s1466_s0  }
  0x4a   : > { %s1711_s8 = sshll.u32 (!%p1605_p8), %s1708_s5, 3  ;;  %s479_s22 = scalar_lea.sflag (!%p1605_p8), [#allocation5], %s1708_s5 }
  0x4b   : > { %s482_s23 = scalar_lea.vmem (!%p1605_p8), [#allocation4], %s1711_s8 }
  0x4c   : > { %1433 = dma.done.wait (%p1592_p4), %s479_s22, 128  }
  0x4d   : > { %1435 = vsyncadd (%p1592_p4), %s479_s22, 4294967168  ;;  %s488_s24 = sand.u32 1, %s1583_s26   ;;  %s492_s19 = scalar_lea.vmem [#allocation7], %s1711_s8 }
  0x4e   : > { %s489_s14 = scalar_lea.sflag [#allocation8], %s488_s24 }
  0x4f   : > { %1437 = dma.done.wait (%p1592_p4), %s489_s14, 2176  }
  0x50   : > { %1439 = vsyncadd (%p1592_p4), %s489_s14, 4294965120  ;;  %s1031_s13 = sshll.u32 %s1708_s5, 7  ;;  %s509_s29 = scalar_lea.sflag [#allocation11], %s488_s24 }
  0x51   : > { %s1726_s27 = scalar_lea.vmem [#allocation9], %s1031_s13  ;;  %s1728_s12 = scalar_lea.vmem [#allocation10], %s1031_s13 }
  0x52   : > { %1441 = dma.done.wait (%p1592_p4), %s509_s29, 2048  }
  0x53   : > { %1443 = vsyncadd (%p1592_p4), %s509_s29, 4294965248 }
  0x54   : > { %1445 = dma.done.wait (%p81_p1), [#allocation11], 2048  }
  0x55   : > { %1447 = vsyncadd (%p81_p1), [#allocation11], 4294965248 }
  0x56   : > { %1449 = dma.done.wait (%p81_p1), [#allocation14], 2048  }
  0x57   : > { %1451 = vsyncadd (%p81_p1), [#allocation14], 4294965248  ;;  %v602_v0 = vld [vmem:[#allocation12 + $0x78] sm:$0xff]  ;;  %v601_v1 = vld [vmem:[#allocation12 + $0x70] sm:$0xff]  ;;  %s1907_s26 = sld [smem:[#allocation28_spill]]  ;;  %s582_s2 = scalar_lea.vmem [#allocation16], %s1711_s8 }
  0x58   : > { %607 = vmatpush.msra.mxu0 %v602_v0  ;;  %v600_v2 = vld [vmem:[#allocation12 + $0x68] sm:$0xff]  ;;  %v599_v3 = vld [vmem:[#allocation12 + $0x60] sm:$0xff]  ;;  %v645_v4 = vld [vmem:[%s1726_s27 + $0x78] sm:$0xff]  ;;  %s1908_s20 = sld [smem:[#allocation35_spill]]  ;;  %s800_s24 = sshll.u32 %s582_s2, 4  ;;  %s801_s24 = int_to_ptr.vmem [resolvable:$true] %s800_s24 }
  0x59   : > { %v598_v5 = vld [vmem:[#allocation12 + $0x58] sm:$0xff]  ;;  %650 = vmatpush.msra.mxu1 %v645_v4  ;;  %v644_v6 = vld [vmem:[%s1726_s27 + $0x70] sm:$0xff]  ;;  %v643_v7 = vld [vmem:[%s1726_s27 + $0x68] sm:$0xff]  ;;  %s1909_s17 = sld [smem:[#allocation37_spill]]  ;;  %s772_s13 = scalar_lea.sflag [#allocation17], %s1708_s5 }
  0x5a   : > { %608 = vmatpush.msra.mxu0 %v601_v1  ;;  %v597_v8 = vld [vmem:[#allocation12 + $0x50] sm:$0xff]  ;;  %v642_v9 = vld [vmem:[%s1726_s27 + $0x60] sm:$0xff]  ;;  %v596_v10 = vld [vmem:[#allocation12 + $0x48] sm:$0xff]  ;;  %s1911_s22 = sld [smem:[#allocation41_spill]] }
  0x5b   : > { %651 = vmatpush.msra.mxu1 %v644_v6  ;;  %v641_v11 = vld [vmem:[%s1726_s27 + $0x58] sm:$0xff]  ;;  %v595_v12 = vld [vmem:[#allocation12 + $0x40] sm:$0xff]  ;;  %v640_v13 = vld [vmem:[%s1726_s27 + $0x50] sm:$0xff] }
  0x5c   : > { %609 = vmatpush.msra.mxu0 %v600_v2  ;;  %v594_v14 = vld [vmem:[#allocation12 + $0x38] sm:$0xff]  ;;  %v639_v15 = vld [vmem:[%s1726_s27 + $0x48] sm:$0xff]  ;;  %v593_v16 = vld [vmem:[#allocation12 + $0x30] sm:$0xff] }
  0x5d   : > { %652 = vmatpush.msra.mxu1 %v643_v7  ;;  %v638_v17 = vld [vmem:[%s1726_s27 + $0x40] sm:$0xff]  ;;  %v592_v18 = vld [vmem:[#allocation12 + $0x28] sm:$0xff]  ;;  %v637_v19 = vld [vmem:[%s1726_s27 + $0x38] sm:$0xff]  ;;  %p583_p1 = scmp.lt.s32.totalorder %s1907_s26, 1  ;;  %s720_s6 = sld [smem:[#allocation3 + %s1907_s26]] }
  0x5e   : > { %610 = vmatpush.msra.mxu0 %v599_v3  ;;  %v591_v20 = vld [vmem:[#allocation12 + $0x20] sm:$0xff]  ;;  %v636_v21 = vld [vmem:[%s1726_s27 + $0x30] sm:$0xff]  ;;  %v590_v22 = vld [vmem:[#allocation12 + $0x18] sm:$0xff]  ;;  %s1039_s11 = sshll.u32 %s1907_s26, 3 }
  0x5f   : > { %653 = vmatpush.msra.mxu1 %v642_v9  ;;  %v635_v23 = vld [vmem:[%s1726_s27 + $0x28] sm:$0xff]  ;;  %v589_v24 = vld [vmem:[#allocation12 + $0x10] sm:$0xff]  ;;  %v634_v25 = vld [vmem:[%s1726_s27 + $0x20] sm:$0xff]  ;;  %s584_s28 = scalar_select %p583_p1, %s1907_s26, 1 }
  0x60   : > { %611 = vmatpush.msra.mxu0 %v598_v5  ;;  %v588_v26 = vld [vmem:[#allocation12 + $0x8] sm:$0xff]  ;;  %v587_v27 = vld [vmem:[#allocation12] sm:$0xff]  ;;  %v633_v29 = vld [vmem:[%s1726_s27 + $0x18] sm:$0xff]  ;;  %s1912_s14 = smov %s1911_s22 }
  0x61   : > { %654 = vmatpush.msra.mxu1 %v641_v11  ;;  %v1756_v28 = vld [vmem:[%s482_s23] sm:$0xff]  ;;  %s585_s15 = scalar_lea.vmem %s1908_s20, %s584_s28  ;;  %v632_v30 = vld [vmem:[%s1726_s27 + $0x10] sm:$0xff]  ;;  %v699_v42 = vld [vmem:[%s1728_s12 + $0x78] sm:$0xff]  ;;  %s798_s23 = scalar_lea.hbm %s1911_s22, %s1039_s11 }
  0x62   : > { %612 = vmatpush.msra.mxu0 %v597_v8  ;;  %v631_v31 = vld [vmem:[%s1726_s27 + $0x8] sm:$0xff]  ;;  %v630_v32 = vld [vmem:[%s1726_s27] sm:$0xff]  ;;  %v627_v35 = vld [vmem:[%s492_s19] sm:$0xff]  ;;  %700 = vmatpush.msra.mxu2 %v699_v42  ;;  %s802_s19 = sshll.u32 %s798_s23, 4  ;;  %s1370_s26 = scalar_lea.hbm %s1912_s14, 16  ;;  %s803_s19 = int_to_ptr.hbm [resolvable:$true] %s802_s19 }
  0x63   : > { %655 = vmatpush.msra.mxu1 %v640_v13  ;;  %v1151_v33 = vld [vmem:[%s1909_s17] ss:$0 sm:$0xff]  ;;  %v698_v43 = vld [vmem:[%s1728_s12 + $0x70] sm:$0xff]  ;;  %v697_v44 = vld [vmem:[%s1728_s12 + $0x68] sm:$0xff]  ;;  %s1364_s27 = sshra.s32 %s803_s19, 4  ;;  %s1365_s27 = int_to_ptr.hbm [resolvable:$true] %s1364_s27 }
  0x64   : > { %613 = vmatpush.msra.mxu0 %v596_v10  ;;  %v1152_v39 = vld [vmem:[%s585_s15] ss:$0 sm:$0xff]  ;;  %701 = vmatpush.msra.mxu2 %v698_v43  ;;  %v695_v46 = vld [vmem:[%s1728_s12 + $0x58] sm:$0xff]  ;;  %v694_v47 = vld [vmem:[%s1728_s12 + $0x50] sm:$0xff]  ;;  %s1366_s29 = scalar_lea.hbm %s1365_s27, 8  ;;  %p1371_p10 = scmp.lt.s32.totalorder %s1365_s27, %s1912_s14 }
  0x65   : > { %656 = vmatpush.msra.mxu1 %v639_v15  ;;  %v696_v45 = vld [vmem:[%s1728_s12 + $0x60] sm:$0xff]  ;;  %v693_v48 = vld [vmem:[%s1728_s12 + $0x48] sm:$0xff]  ;;  %v691_v54 = vld [vmem:[%s1728_s12 + $0x38] sm:$0xff]  ;;  %p1367_p2 = scmp.ne.s32.totalorder %s1365_s27, %s1366_s29  ;;  %p1372_p13 = scmp.lt.s32.totalorder %s1370_s26, %s1366_s29 }
  0x66   : > { %614 = vmatpush.msra.mxu0 %v595_v12  ;;  %702 = vmatpush.msra.mxu2 %v697_v44  ;;  %v692_v53 = vld [vmem:[%s1728_s12 + $0x40] sm:$0xff]  ;;  %v690_v55 = vld [vmem:[%s1728_s12 + $0x30] sm:$0xff]  ;;  %v689_v56 = vld [vmem:[%s1728_s12 + $0x28] sm:$0xff] }
  0x67   : > { %657 = vmatpush.msra.mxu1 %v638_v17  ;;  %v688_v57 = vld [vmem:[%s1728_s12 + $0x20] sm:$0xff]  ;;  %v687_v58 = vld [vmem:[%s1728_s12 + $0x18] sm:$0xff]  ;;  %v686_v59 = vld [vmem:[%s1728_s12 + $0x10] sm:$0xff]  ;;  %p1368_p4 = pnand %p1367_p2, %p1632_p5  ;;  %p1373_p0 = por %p1372_p13, %p1371_p10 }
  0x68   : > { %615 = vmatpush.msra.mxu0 %v594_v14  ;;  %703 = vmatpush.msra.mxu2 %v696_v45  ;;  %v685_v60 = vld [vmem:[%s1728_s12 + $0x8] sm:$0xff]  ;;  %v684_v61 = vld [vmem:[%s1728_s12] sm:$0xff]  ;;  %v738_v62 = vld [vmem:[#allocation13 + $0x78] sm:$0xff] }
  0x69   : > { %658 = vmatpush.msra.mxu1 %v637_v19  ;;  %v737_v63 = vld [vmem:[#allocation13 + $0x70] sm:$0xff]  ;;  %743 = vmatpush.msra.mxu3 %v738_v62  ;;  %v736_v0 = vld [vmem:[#allocation13 + $0x68] sm:$0xff]  ;;  %v735_v1 = vld [vmem:[#allocation13 + $0x60] sm:$0xff]  ;;  %p1369_p8 = pneg %p1368_p4 }
  0x6a   : > { %616 = vmatpush.msra.mxu0 %v593_v16  ;;  %704 = vmatpush.msra.mxu2 %v695_v46  ;;  %v734_v2 = vld [vmem:[#allocation13 + $0x58] sm:$0xff]  ;;  %v733_v3 = vld [vmem:[#allocation13 + $0x50] sm:$0xff]  ;;  %v732_v4 = vld [vmem:[#allocation13 + $0x48] sm:$0xff] }
  0x6b   : > { %659 = vmatpush.msra.mxu1 %v636_v21  ;;  %744 = vmatpush.msra.mxu3 %v737_v63  ;;  %v731_v5 = vld [vmem:[#allocation13 + $0x40] sm:$0xff]  ;;  %v730_v7 = vld [vmem:[#allocation13 + $0x38] sm:$0xff]  ;;  %v729_v9 = vld [vmem:[#allocation13 + $0x30] sm:$0xff]  ;;  %v721_v21 = vstv %s720_s6  ;;  %p1374_p3 = pnand %p1373_p0, %p1369_p8 }
  0x6c   : > { %617 = vmatpush.msra.mxu0 %v592_v18  ;;  %705 = vmatpush.msra.mxu2 %v694_v47  ;;  %v728_v10 = vld [vmem:[#allocation13 + $0x28] sm:$0xff]  ;;  %v727_v11 = vld [vmem:[#allocation13 + $0x20] sm:$0xff]  ;;  %v726_v12 = vld [vmem:[#allocation13 + $0x18] sm:$0xff] }
  0x6d   : > { %660 = vmatpush.msra.mxu1 %v635_v23  ;;  %745 = vmatpush.msra.mxu3 %v736_v0  ;;  %v725_v15 = vld [vmem:[#allocation13 + $0x10] sm:$0xff]  ;;  %v724_v19 = vld [vmem:[#allocation13 + $0x8] sm:$0xff] }
  0x6e   : > { %618 = vmatpush.msra.mxu0 %v591_v20  ;;  %706 = vmatpush.msra.mxu2 %v693_v48  ;;  %v723_v20 = vld [vmem:[#allocation13] sm:$0xff] }
  0x6f   : > { %661 = vmatpush.msra.mxu1 %v634_v25  ;;  %746 = vmatpush.msra.mxu3 %v735_v1 }
  0x70   : > { %619 = vmatpush.msra.mxu0 %v590_v22  ;;  %707 = vmatpush.msra.mxu2 %v692_v53 }
  0x71   : > { %662 = vmatpush.msra.mxu1 %v633_v29  ;;  %747 = vmatpush.msra.mxu3 %v734_v2 }
  0x72   : > { %620 = vmatpush.msra.mxu0 %v589_v24  ;;  %708 = vmatpush.msra.mxu2 %v691_v54 }
  0x73   : > { %663 = vmatpush.msra.mxu1 %v632_v30  ;;  %748 = vmatpush.msra.mxu3 %v733_v3 }
  0x74   : > { %621 = vmatpush.msra.mxu0 %v588_v26  ;;  %709 = vmatpush.msra.mxu2 %v690_v55 }
  0x75   : > { %664 = vmatpush.msra.mxu1 %v631_v31  ;;  %749 = vmatpush.msra.mxu3 %v732_v4 }
  0x76   : > { %622 = vmatpush.msra.mxu0 %v587_v27  ;;  %710 = vmatpush.msra.mxu2 %v689_v56 }
  0x77   : > { %623 = vmatmul.f32.vlgmr.msra.gmra.mxu0 %v1756_v28  ;;  %665 = vmatpush.msra.mxu1 %v630_v32 }
  0x78   : > { %711 = vmatpush.msra.mxu2 %v688_v57  ;;  %750 = vmatpush.msra.mxu3 %v731_v5 }
  0x7a   : > { %712 = vmatpush.msra.mxu2 %v687_v58  ;;  %751 = vmatpush.msra.mxu3 %v730_v7 }
  0x7c   : > { %713 = vmatpush.msra.mxu2 %v686_v59  ;;  %752 = vmatpush.msra.mxu3 %v729_v9 }
  0x7e   : > { %714 = vmatpush.msra.mxu2 %v685_v60  ;;  %753 = vmatpush.msra.mxu3 %v728_v10 }
  0x80   : > { %715 = vmatpush.msra.mxu2 %v684_v61  ;;  %754 = vmatpush.msra.mxu3 %v727_v11 }
  0x82   : > { %755 = vmatpush.msra.mxu3 %v726_v12 }
  0x84   : > { %756 = vmatpush.msra.mxu3 %v725_v15 }
  0x86   : > { %757 = vmatpush.msra.mxu3 %v724_v19 }
  0x88   : > { %758 = vmatpush.msra.mxu3 %v723_v20 }
  0xf4   : > { %v624_v34 = vpop.f32.mrf.mxu0 }
  0xf5   : > { %v625_v36 = vadd.f32 %v1151_v33, %v624_v34 }
  0xf7   : > { %v628_v37 = vadd.f32 %v627_v35, %v625_v36 }
  0xf9   : > { %v629_v38 = vmul.f32 0.70710677, %v628_v37 }
  0xfb   : > { %666 = vmatmul.f32.vlgmr.msra.gmra.mxu1 %v629_v38 }
 0x178   : > { %v667_v40 = vpop.f32.mrf.mxu1 }
 0x179   : > { %v668_v41 = vadd.f32 %v1152_v39, %v667_v40 }
 0x17b   : > { %670 = vmax.xlane.f32.xlu0 %v668_v41 }
 0x1ee   : > { %v671_v49 = vpop.xlane.xlu0 %670 }
 0x1ef   : > { %v672_v50 = vsub.f32 %v668_v41, %v671_v49 }
 0x1f1   : > { %v673_v51 = vmul.f32 1.442695, %v672_v50 }
 0x1f3   : > { %1154 = vpow2.f32 %v673_v51 }
 0x1f9   : > { %v1155_v52 = vpop.eup %1154 }
 0x1fa   : > { %675 = vadd.xlane.f32.xlu0 %v1155_v52 }
 0x26d   : > { %v676_v6 = vpop.xlane.xlu0 %675 }
 0x26e   : > { %v677_v8 = vmax.f32 %v676_v6, 1e-30 }
 0x270   : > { %1156 = vrcp.f32 %v677_v8 }
 0x276   : > { %v1157_v13 = vpop.eup %1156 }
 0x277   : > { %v679_v14 = vmul.f32 %v1157_v13, %v677_v8 }
 0x279   : > { %v680_v16 = vsub.f32 2.0, %v679_v14 }
 0x27b   : > { %v681_v17 = vmul.f32 %v1157_v13, %v680_v16 }
 0x27d   : > { %v682_v18 = vmul.f32 %v1155_v52, %v681_v17 }
 0x27f   : > { %716 = vmatmul.f32.vlgmr.msra.gmra.mxu2 %v682_v18  ;;  %683 = vst [vmem:[%s582_s2] sm:$0xff] %v682_v18 }
 0x302   : > { %v717_v22 = vpop.f32.mrf.mxu2 }
 0x303   : > { %v722_v23 = vmul.f32 %v721_v21, %v717_v22 }
 0x305   : > { %759 = vmatmul.f32.vlgmr.msra.gmra.mxu3 %v722_v23 }
 0x306   : > { %1377 = shalt.err (!%p1374_p3)
}
 0x307   : > { %1062 = dma.vmem_to_hbm [thread:$0]  (%p1632_p5), %s801_s24, 128, %s803_s19, %s772_s13  }
 0x308   : > { %s1913_s10 = sld [smem:[#allocation39_spill]]  ;;  %s575_s7 = scalar_lea.vmem [#allocation15], %s1711_s8 }
 0x309   : > { %s1914_s2 = sld [smem:[#allocation40_spill]]  ;;  %s785_s30 = sshll.u32 %s575_s7, 4  ;;  %s786_s30 = int_to_ptr.vmem [resolvable:$true] %s785_s30 }
 0x30a   : > { %s767_s23 = scalar_lea.sflag [#allocation6], %s1708_s5 }
 0x30e   : > { %v1153_v24 = vld [vmem:[%s1913_s10] ss:$0 sm:$0xff] }
 0x30f   : > { %s783_s6 = scalar_lea.hbm %s1914_s2, %s1039_s11  ;;  %s1398_s8 = scalar_lea.hbm %s1914_s2, 16 }
 0x310   : > { %s787_s22 = sshll.u32 %s783_s6, 4  ;;  %s788_s22 = int_to_ptr.hbm [resolvable:$true] %s787_s22 }
 0x311   : > { %s1392_s24 = sshra.s32 %s788_s22, 4  ;;  %s1393_s24 = int_to_ptr.hbm [resolvable:$true] %s1392_s24 }
 0x312   : > { %s1394_s19 = scalar_lea.hbm %s1393_s24, 8  ;;  %p1399_p1 = scmp.lt.s32.totalorder %s1393_s24, %s1914_s2 }
 0x313   : > { %p1395_p7 = scmp.ne.s32.totalorder %s1393_s24, %s1394_s19  ;;  %p1400_p2 = scmp.lt.s32.totalorder %s1398_s8, %s1394_s19 }
 0x315   : > { %p1396_p9 = pnand %p1395_p7, %p1632_p5  ;;  %p1401_p4 = por %p1400_p2, %p1399_p1 }
 0x317   : > { %p1397_p12 = pneg %p1396_p9 }
 0x319   : > { %p1402_p8 = pnand %p1401_p4, %p1397_p12 }
 0x388   : > { %v760_v25 = vpop.f32.mrf.mxu3 }
 0x389   : > { %v761_v26 = vadd.f32 %v1153_v24, %v760_v25 }
 0x38b   : > { %v763_v27 = vadd.f32 %v761_v26, %v1756_v28 }
 0x38d   : > { %v764_v29 = vmul.f32 0.70710677, %v763_v27 }
 0x38f   : > { %765 = vst [vmem:[%s575_s7] sm:$0xff] %v764_v29 }
 0x390   : > { %1405 = shalt.err (!%p1402_p8)
}
 0x391   : > { %1061 = dma.vmem_to_hbm [thread:$0]  (%p1632_p5), %s786_s30, 128, %s788_s22, %s767_s23  }
 0x392 PF: > { %s1915_s5 = sld [smem:[#allocation26_spill]]  ;;  %p1086_p10 = pnand %p1017_p11, %p1597_p6 }
 0x394   : > { %p1087_p13 = pneg %p1086_p10 }
 0x398   : > { %s814_s28 = sand.u32 1, %s1915_s5  }
 0x399   : > { %s815_s26 = scalar_lea.sflag [#allocation6], %s814_s28 }
 0x39a   : > { %1453 = dma.done.wait (%p1087_p13), %s815_s26, 128  }
 0x39b   : > { %1455 = vsyncadd (%p1087_p13), %s815_s26, 4294967168  ;;  %s825_s9 = scalar_lea.sflag [#allocation17], %s814_s28 }
 0x39c   : > { %1457 = dma.done.wait (%p1087_p13), %s825_s9, 128  }
 0x39d   : > { %1459 = vsyncadd (%p1087_p13), %s825_s9, 4294967168  ;;  %s46_s25 = sadd.s32 1, %s1482_s25   ;;  %s1917_s18 = sld [smem:[#allocation27_spill]] }
 0x39e   : > { %p43_p0 = scmp.ge.s32.totalorder %s46_s25, 4   ;;  %s1918_s22 = sld [smem:[#allocation33_spill]] }
 0x39f   : > { %s1919_s23 = sld [smem:[#allocation29_spill]]  ;;  %s1921_s21 = smov %s1466_s0 }
 0x3a0   : > { %s1920_s24 = sld [smem:[#allocation31_spill]]  ;;  %45 = sbr.rel (!%p43_p0) target bundleno = 26 (0x1a), region = 166 }
 0x3a3   : > { %s1922_s0 = smov %s1917_s18 }
 0x3a5   :  { %831 = vsyncpa [#allocation5], 1 }
 0x3a6   :  { %833 = vsyncpa [#allocation5 + $0x1], 1 }
 0x3a7   :  { %834 = vsyncpa [#allocation8], 1 }
 0x3a8   :  { %836 = vsyncpa [#allocation8 + $0x1], 1 }
 0x3a9   :  { %837 = vsyncpa [#allocation11], 1 }
 0x3aa   :  { %839 = vsyncpa [#allocation11 + $0x1], 1 }
 0x3ab   :  { %840 = vsyncpa [#allocation14], 1 }
 0x3ac   :  { %841 = vsyncpa [#allocation6], 1 }
 0x3ad   :  { %843 = vsyncpa [#allocation6 + $0x1], 1 }
 0x3ae   :  { %844 = vsyncpa [#allocation17], 1 }
 0x3af   :  { %846 = vsyncpa [#allocation17 + $0x1], 1 }

// kernel: tpu_custom_call.1
= control target key start
LH: loop header
LB: loop body
LE: loop exit
PB: predicated region body
PF: predicated region fallthrough
CT: control target
= control target key end

     0   :  { %s1484_s20 = smov [#allocation3]   ;;  %s1848_s0 = inlined_call_operand.hbm [shape: f32[2], index: 0, kind: input, shape index: {}]   ;;  %s1849_s1 = inlined_call_operand.hbm [shape: f32[2,8,128], index: 1, kind: input, shape index: {}]   ;;  %s1850_s2 = inlined_call_operand.hbm [shape: f32[2,8,128], index: 2, kind: input, shape index: {}]   ;;  %s1851_s3 = inlined_call_operand.hbm [shape: f32[2,128,128], index: 3, kind: input, shape index: {}]   ;;  %s1852_s4 = inlined_call_operand.hbm [shape: f32[2,128,128], index: 4, kind: input, shape index: {}]   ;;  %s1853_s5 = inlined_call_operand.vmem [shape: f32[2,1,128], index: 5, kind: input, shape index: {}]   ;;  %s1854_s6 = inlined_call_operand.hbm [shape: f32[128,128], index: 6, kind: input, shape index: {}]   ;;  %s1855_s7 = inlined_call_operand.vmem [shape: f32[1,128], index: 7, kind: input, shape index: {}]   ;;  %s1856_s8 = inlined_call_operand.hbm [shape: f32[128,128], index: 8, kind: input, shape index: {}]   ;;  %s1857_s9 = inlined_call_operand.vmem [shape: f32[1,128], index: 9, kind: input, shape index: {}]   ;;  %s1858_s10 = inlined_call_operand.hbm [shape: f32[2,8,128], index: 10, kind: output, shape index: {0}]   ;;  %s1859_s11 = inlined_call_operand.hbm [shape: f32[2,8,128], index: 11, kind: output, shape index: {1}]  }
   0x1   :  { %1877 = sst [smem:[#allocation34_spill]] %s1850_s2  ;;  %s18_s19 = sshll.u32 %s1848_s0, 4  ;;  %s19_s19 = int_to_ptr.hbm [resolvable:$true] %s18_s19 }
   0x2   :  { %1878 = sst [smem:[#allocation35_spill]] %s1853_s5 }
   0x3   :  { %1879 = sst [smem:[#allocation36_spill]] %s1854_s6 }
   0x4   :  { %1880 = sst [smem:[#allocation37_spill]] %s1855_s7 }
   0x5   :  { %1881 = sst [smem:[#allocation38_spill]] %s1856_s8 }
   0x6   :  { %1882 = sst [smem:[#allocation39_spill]] %s1857_s9 }
   0x7   :  { %1883 = sst [smem:[#allocation40_spill]] %s1858_s10 }
   0x8   :  { %1884 = sst [smem:[#allocation41_spill]] %s1859_s11 }
   0x9   :  { %21 = dma.hbm_to_smem %s19_s19, 16, %s1484_s20, [#allocation2] }
   0xa   :  { %1430 = dma.done.wait [#allocation2], 16 }
   0xb   :  { %1431 = vsyncadd [#allocation2], 4294967280 }
   0xc   :  { %24 = sfence }
   0xd   :  { %25 = vsyncpa [#allocation5], 0 }
   0xe   :  { %27 = vsyncpa [#allocation5 + $0x1], 0 }
   0xf   :  { %28 = vsyncpa [#allocation8], 0 }
  0x10   :  { %30 = vsyncpa [#allocation8 + $0x1], 0 }
  0x11   :  { %31 = vsyncpa [#allocation11], 0 }
  0x12   :  { %33 = vsyncpa [#allocation11 + $0x1], 0 }
  0x13   :  { %34 = vsyncpa [#allocation14], 0 }
  0x14   :  { %35 = vsyncpa [#allocation6], 0 }
  0x15   :  { %37 = vsyncpa [#allocation6 + $0x1], 0 }
  0x16   :  { %38 = vsyncpa [#allocation17], 0 }
  0x17   :  { %40 = vsyncpa [#allocation17 + $0x1], 0  ;;  %s1552_s21 = smov 0   ;;  %s1554_s0 = smov 0  }
  0x18   :  { %s1556_s22 = smov 0   ;;  %s1558_s23 = smov 0  }
  0x19   :  { %s1560_s24 = smov 0   ;;  %s1562_s25 = smov 0  }
  0x1a LB: > { %1885 = sst [smem:[#allocation26_spill]] %s1462_s21  ;;  %s1583_s26 = sadd.s32 4294967295, %s1482_s25   ;;  %s1482_s25 = sphi %s1562_s25, %s46_s25   ;;  %s1478_s24 = sphi %s1560_s24, %s1920_s24   ;;  %s1474_s23 = sphi %s1558_s23, %s1919_s23   ;;  %s1470_s22 = sphi %s1556_s22, %s1918_s22   ;;  %s1466_s0 = sphi %s1554_s0, %s1922_s0   ;;  %s1462_s21 = sphi %s1552_s21, %s1921_s21  }
  0x1b   : > { %1886 = sst [smem:[#allocation27_spill]] %s1470_s22  ;;  %s1013_s27 = sadd.s32 4294967294, %s1482_s25  }
  0x1c   : > { %1887 = sst [smem:[#allocation28_spill]] %s1474_s23  ;;  %p80_p0 = scmp.ne.s32.totalorder %s1466_s0, %s1462_s21 }
  0x1d   : > { %1888 = sst [smem:[#allocation29_spill]] %s1478_s24  ;;  %p81_p1 = scmp.eq.s32.totalorder %s1583_s26, 0 }
  0x1e   : > { %p296_p2 = scmp.eq.s32.totalorder %s1583_s26, 1  ;;  %p302_p3 = scmp.eq.s32.totalorder %s1013_s27, 1 }
  0x1f   : > { %p1592_p4 = por %p81_p1, %p80_p0  ;;  %p1014_p5 = scmp.ge.s32.totalorder %s1482_s25, 1 }
  0x20   : > { %p1597_p6 = por %p302_p3, %p80_p0  ;;  %p337_p7 = scmp.lt.s32.totalorder %s1482_s25, 3 }
  0x21   : > { %s1892_s6 = sld [smem:[#allocation36_spill]]  ;;  %s1485_s15 = smov [#allocation12]  }
  0x22   : > { %s1890_s29 = scalar_select %p1597_p6, 1, 0 }
  0x23   : > { %p1605_p8 = pnand %p1014_p5, %p337_p7  ;;  %s350_s16 = sshll.u32 %s1485_s15, 4  ;;  %s351_s16 = int_to_ptr.vmem [resolvable:$true] %s350_s16 }
  0x24   : > { %1891 = sst [smem:[#allocation30_spill]] %s1890_s29  ;;  %p1017_p11 = scmp.ge.s32.totalorder %s1482_s25, 2 }
  0x25   : > { %p1065_p9 = pneg %p1605_p8  ;;  %s1860_s18 = smov 128  }
  0x26   : > { %s1862_s19 = smov 8   ;;  %s58_s20 = sadd.s32 1, %s1478_s24 }
  0x27   : > { %s348_s13 = sshll.u32 %s1892_s6, 4  ;;  %p1613_p10 = pnand %p1065_p9, %p81_p1  ;;  %s349_s13 = int_to_ptr.hbm [resolvable:$true] %s348_s13 }
  0x28   : > { %p60_p12 = scmp.ge.s32.totalorder %s58_s20, 2  ;;  %s67_s27 = sadd.s32 1, %s1470_s22 }
  0x29   : > { %1068 = dma.hbm_to_vmem [thread:$0]  (!%p1613_p10), %s349_s13, 2048, %s351_s16, [#allocation11], %s1860_s18, %s1860_s18, %s1862_s19  }
  0x2a   : > { %p74_p13 = scmp.ne.s32.totalorder %s1470_s22, %s1466_s0  ;;  %p75_p0 = scmp.eq.s32.totalorder %s1482_s25, 0 }
  0x2b   : > { %s1924_s20 = smov (%p60_p12, %s58_s20), 0  ;;  %p1094_p7 = scmp.lt.s32.totalorder %s1482_s25, 2 }
  0x2c   : > { %1895 = sst [smem:[#allocation31_spill]] %s1924_s20  ;;  %p76_p3 = por %p75_p0, %p74_p13 }
  0x2d   : > { %p1632_p5 = por %p296_p2, %p74_p13  ;;  %s62_s12 = ssub.s32 %s1478_s24, %s1924_s20 }
  0x2e   : > { %p65_p9 = scmp.eq.s32.totalorder %s62_s12, 0  ;;  %s1640_s13 = sand.u32 1, %s1470_s22  }
  0x2f   : > { %s1896_s30 = scalar_select %p1632_p5, 1, 0 }
  0x30   : > { %s1870_s15 = sshll.u32 %s1640_s13, 3  ;;  %s1872_s16 = sshll.u32 %s1478_s24, 3 }
  0x31   : > { %1897 = sst [smem:[#allocation32_spill]] %s1896_s30  ;;  %p1647_p12 = pnand %p1094_p7, %p76_p3 }
  0x32   : > { %s1645_s18 = scalar_select %p65_p9, %s1470_s22, %s67_s27  }
  0x33   : > { %s1871_s6 = sand.u32 1, %s1482_s25   ;;  %s1900_s2 = sld [smem:[#allocation34_spill]] }
  0x34   : > { %1898 = sst [smem:[#allocation33_spill]] %s1645_s18  ;;  %s408_s10 = scalar_lea.vmem [#allocation7], %s1870_s15 }
  0x35   : > { %s417_s9 = sshll.u32 %s408_s10, 4  ;;  %s1661_s27 = scalar_lea.sflag [#allocation8], %s1871_s6  ;;  %s418_s9 = int_to_ptr.vmem [resolvable:$true] %s417_s9 }
  0x36   : > { %s1022_s18 = sshll.u32 %s1640_s13, 7  ;;  %s1043_s22 = sshll.u32 %s1478_s24, 7 }
  0x37   : > { %s428_s11 = scalar_lea.vmem [#allocation9], %s1022_s18  ;;  %s450_s20 = scalar_lea.vmem [#allocation10], %s1022_s18 }
  0x38   : > { %s436_s29 = sshll.u32 %s428_s11, 4  ;;  %s1901_s8 = sld [smem:[#allocation38_spill]]  ;;  %s437_s29 = int_to_ptr.vmem [resolvable:$true] %s436_s29 }
  0x39   : > { %s413_s12 = scalar_lea.hbm %s1900_s2, %s1872_s16  ;;  %s1488_s16 = smov [#allocation13]  }
  0x3a   : > { %s415_s21 = sshll.u32 %s413_s12, 4  ;;  %s458_s12 = sshll.u32 %s450_s20, 4  ;;  %s416_s21 = int_to_ptr.hbm [resolvable:$true] %s415_s21  ;;  %s459_s12 = int_to_ptr.vmem [resolvable:$true] %s458_s12 }
  0x3b   : > { %1078 = dma.hbm_to_vmem [thread:$0]  (!%p1647_p12), %s416_s21, 128, %s418_s9, %s1661_s27  }
  0x3c   : > { %s367_s2 = sshll.u32 %s1488_s16, 4  ;;  %s1902_s9 = smov 8   ;;  %s368_s2 = int_to_ptr.vmem [resolvable:$true] %s367_s2 }
  0x3d   : > { %s1903_s21 = smov 128   ;;  %s1904_s11 = sshll.u32 %s1478_s24, 3 }
  0x3e   : > { %s365_s6 = sshll.u32 %s1901_s8, 4  ;;  %s393_s30 = scalar_lea.hbm %s1849_s1, %s1904_s11  ;;  %s366_s6 = int_to_ptr.hbm [resolvable:$true] %s365_s6 }
  0x3f   : > { %1071 = dma.hbm_to_vmem [thread:$0]  (!%p1613_p10), %s366_s6, 2048, %s368_s2, [#allocation14], %s1903_s21, %s1903_s21, %s1902_s9  }
  0x40   : > { %s1905_s7 = sshll.u32 %s1640_s13, 3  ;;  %s395_s8 = sshll.u32 %s393_s30, 4  ;;  %s396_s8 = int_to_ptr.hbm [resolvable:$true] %s395_s8 }
  0x41   : > { %s388_s15 = scalar_lea.vmem [#allocation4], %s1905_s7  ;;  %s433_s17 = scalar_lea.hbm %s1851_s3, %s1043_s22 }
  0x42   : > { %s397_s10 = sshll.u32 %s388_s15, 4  ;;  %s385_s23 = scalar_lea.sflag [#allocation5], %s1640_s13  ;;  %s398_s10 = int_to_ptr.vmem [resolvable:$true] %s397_s10 }
  0x43   : > { %1075 = dma.hbm_to_vmem [thread:$0]  (!%p1647_p12), %s396_s8, 128, %s398_s10, %s385_s23  }
  0x44   : > { %s434_s2 = sshll.u32 %s433_s17, 4  ;;  %s455_s18 = scalar_lea.hbm %s1852_s4, %s1043_s22  ;;  %s435_s2 = int_to_ptr.hbm [resolvable:$true] %s434_s2 }
  0x45   : > { %s456_s11 = sshll.u32 %s455_s18, 4  ;;  %s1906_s7 = sand.u32 1, %s1482_s25   ;;  %s457_s11 = int_to_ptr.hbm [resolvable:$true] %s456_s11 }
  0x46   : > { %1081 = dma.hbm_to_vmem [thread:$0]  (!%p1647_p12), %s435_s2, 2048, %s437_s29, %s1661_s27, %s1903_s21, %s1903_s21, %s1902_s9  }
  0x47   : > { %s447_s30 = scalar_lea.sflag [#allocation11], %s1906_s7  ;;  %476 = sbr.rel (%p1605_p8) target bundleno = 914 (0x392), region = 56 }
  0x48   : > { %1084 = dma.hbm_to_vmem [thread:$0]  (!%p1647_p12), %s457_s11, 2048, %s459_s12, %s447_s30, %s1903_s21, %s1903_s21, %s1902_s9  }
  0x49   : > { %s1708_s5 = sand.u32 (!%p1605_p8), 1, %s1466_s0  }
  0x4a   : > { %s1711_s8 = sshll.u32 (!%p1605_p8), %s1708_s5, 3  ;;  %s479_s22 = scalar_lea.sflag (!%p1605_p8), [#allocation5], %s1708_s5 }
  0x4b   : > { %s482_s23 = scalar_lea.vmem (!%p1605_p8), [#allocation4], %s1711_s8 }
  0x4c   : > { %1433 = dma.done.wait (%p1592_p4), %s479_s22, 128  }
  0x4d   : > { %1435 = vsyncadd (%p1592_p4), %s479_s22, 4294967168  ;;  %s488_s24 = sand.u32 1, %s1583_s26   ;;  %s492_s19 = scalar_lea.vmem [#allocation7], %s1711_s8 }
  0x4e   : > { %s489_s14 = scalar_lea.sflag [#allocation8], %s488_s24 }
  0x4f   : > { %1437 = dma.done.wait (%p1592_p4), %s489_s14, 2176  }
  0x50   : > { %1439 = vsyncadd (%p1592_p4), %s489_s14, 4294965120  ;;  %s1031_s13 = sshll.u32 %s1708_s5, 7  ;;  %s509_s29 = scalar_lea.sflag [#allocation11], %s488_s24 }
  0x51   : > { %s1726_s27 = scalar_lea.vmem [#allocation9], %s1031_s13  ;;  %s1728_s12 = scalar_lea.vmem [#allocation10], %s1031_s13 }
  0x52   : > { %1441 = dma.done.wait (%p1592_p4), %s509_s29, 2048  }
  0x53   : > { %1443 = vsyncadd (%p1592_p4), %s509_s29, 4294965248 }
  0x54   : > { %1445 = dma.done.wait (%p81_p1), [#allocation11], 2048  }
  0x55   : > { %1447 = vsyncadd (%p81_p1), [#allocation11], 4294965248 }
  0x56   : > { %1449 = dma.done.wait (%p81_p1), [#allocation14], 2048  }
  0x57   : > { %1451 = vsyncadd (%p81_p1), [#allocation14], 4294965248  ;;  %v602_v0 = vld [vmem:[#allocation12 + $0x78] sm:$0xff]  ;;  %v601_v1 = vld [vmem:[#allocation12 + $0x70] sm:$0xff]  ;;  %s1907_s26 = sld [smem:[#allocation28_spill]]  ;;  %s582_s2 = scalar_lea.vmem [#allocation16], %s1711_s8 }
  0x58   : > { %607 = vmatpush.msra.mxu0 %v602_v0  ;;  %v600_v2 = vld [vmem:[#allocation12 + $0x68] sm:$0xff]  ;;  %v599_v3 = vld [vmem:[#allocation12 + $0x60] sm:$0xff]  ;;  %v645_v4 = vld [vmem:[%s1726_s27 + $0x78] sm:$0xff]  ;;  %s1908_s20 = sld [smem:[#allocation35_spill]]  ;;  %s800_s24 = sshll.u32 %s582_s2, 4  ;;  %s801_s24 = int_to_ptr.vmem [resolvable:$true] %s800_s24 }
  0x59   : > { %v598_v5 = vld [vmem:[#allocation12 + $0x58] sm:$0xff]  ;;  %650 = vmatpush.msra.mxu1 %v645_v4  ;;  %v644_v6 = vld [vmem:[%s1726_s27 + $0x70] sm:$0xff]  ;;  %v643_v7 = vld [vmem:[%s1726_s27 + $0x68] sm:$0xff]  ;;  %s1909_s17 = sld [smem:[#allocation37_spill]]  ;;  %s772_s13 = scalar_lea.sflag [#allocation17], %s1708_s5 }
  0x5a   : > { %608 = vmatpush.msra.mxu0 %v601_v1  ;;  %v597_v8 = vld [vmem:[#allocation12 + $0x50] sm:$0xff]  ;;  %v642_v9 = vld [vmem:[%s1726_s27 + $0x60] sm:$0xff]  ;;  %v596_v10 = vld [vmem:[#allocation12 + $0x48] sm:$0xff]  ;;  %s1911_s22 = sld [smem:[#allocation41_spill]] }
  0x5b   : > { %651 = vmatpush.msra.mxu1 %v644_v6  ;;  %v641_v11 = vld [vmem:[%s1726_s27 + $0x58] sm:$0xff]  ;;  %v595_v12 = vld [vmem:[#allocation12 + $0x40] sm:$0xff]  ;;  %v640_v13 = vld [vmem:[%s1726_s27 + $0x50] sm:$0xff] }
  0x5c   : > { %609 = vmatpush.msra.mxu0 %v600_v2  ;;  %v594_v14 = vld [vmem:[#allocation12 + $0x38] sm:$0xff]  ;;  %v639_v15 = vld [vmem:[%s1726_s27 + $0x48] sm:$0xff]  ;;  %v593_v16 = vld [vmem:[#allocation12 + $0x30] sm:$0xff] }
  0x5d   : > { %652 = vmatpush.msra.mxu1 %v643_v7  ;;  %v638_v17 = vld [vmem:[%s1726_s27 + $0x40] sm:$0xff]  ;;  %v592_v18 = vld [vmem:[#allocation12 + $0x28] sm:$0xff]  ;;  %v637_v19 = vld [vmem:[%s1726_s27 + $0x38] sm:$0xff]  ;;  %p583_p1 = scmp.lt.s32.totalorder %s1907_s26, 1  ;;  %s720_s6 = sld [smem:[#allocation3 + %s1907_s26]] }
  0x5e   : > { %610 = vmatpush.msra.mxu0 %v599_v3  ;;  %v591_v20 = vld [vmem:[#allocation12 + $0x20] sm:$0xff]  ;;  %v636_v21 = vld [vmem:[%s1726_s27 + $0x30] sm:$0xff]  ;;  %v590_v22 = vld [vmem:[#allocation12 + $0x18] sm:$0xff]  ;;  %s1039_s11 = sshll.u32 %s1907_s26, 3 }
  0x5f   : > { %653 = vmatpush.msra.mxu1 %v642_v9  ;;  %v635_v23 = vld [vmem:[%s1726_s27 + $0x28] sm:$0xff]  ;;  %v589_v24 = vld [vmem:[#allocation12 + $0x10] sm:$0xff]  ;;  %v634_v25 = vld [vmem:[%s1726_s27 + $0x20] sm:$0xff]  ;;  %s584_s28 = scalar_select %p583_p1, %s1907_s26, 1 }
  0x60   : > { %611 = vmatpush.msra.mxu0 %v598_v5  ;;  %v588_v26 = vld [vmem:[#allocation12 + $0x8] sm:$0xff]  ;;  %v587_v27 = vld [vmem:[#allocation12] sm:$0xff]  ;;  %v633_v29 = vld [vmem:[%s1726_s27 + $0x18] sm:$0xff]  ;;  %s1912_s14 = smov %s1911_s22 }
  0x61   : > { %654 = vmatpush.msra.mxu1 %v641_v11  ;;  %v1756_v28 = vld [vmem:[%s482_s23] sm:$0xff]  ;;  %s585_s15 = scalar_lea.vmem %s1908_s20, %s584_s28  ;;  %v632_v30 = vld [vmem:[%s1726_s27 + $0x10] sm:$0xff]  ;;  %v699_v42 = vld [vmem:[%s1728_s12 + $0x78] sm:$0xff]  ;;  %s798_s23 = scalar_lea.hbm %s1911_s22, %s1039_s11 }
  0x62   : > { %612 = vmatpush.msra.mxu0 %v597_v8  ;;  %v631_v31 = vld [vmem:[%s1726_s27 + $0x8] sm:$0xff]  ;;  %v630_v32 = vld [vmem:[%s1726_s27] sm:$0xff]  ;;  %v627_v35 = vld [vmem:[%s492_s19] sm:$0xff]  ;;  %700 = vmatpush.msra.mxu2 %v699_v42  ;;  %s802_s19 = sshll.u32 %s798_s23, 4  ;;  %s1370_s26 = scalar_lea.hbm %s1912_s14, 16  ;;  %s803_s19 = int_to_ptr.hbm [resolvable:$true] %s802_s19 }
  0x63   : > { %655 = vmatpush.msra.mxu1 %v640_v13  ;;  %v1151_v33 = vld [vmem:[%s1909_s17] ss:$0 sm:$0xff]  ;;  %v698_v43 = vld [vmem:[%s1728_s12 + $0x70] sm:$0xff]  ;;  %v697_v44 = vld [vmem:[%s1728_s12 + $0x68] sm:$0xff]  ;;  %s1364_s27 = sshra.s32 %s803_s19, 4  ;;  %s1365_s27 = int_to_ptr.hbm [resolvable:$true] %s1364_s27 }
  0x64   : > { %613 = vmatpush.msra.mxu0 %v596_v10  ;;  %v1152_v39 = vld [vmem:[%s585_s15] ss:$0 sm:$0xff]  ;;  %701 = vmatpush.msra.mxu2 %v698_v43  ;;  %v695_v46 = vld [vmem:[%s1728_s12 + $0x58] sm:$0xff]  ;;  %v694_v47 = vld [vmem:[%s1728_s12 + $0x50] sm:$0xff]  ;;  %s1366_s29 = scalar_lea.hbm %s1365_s27, 8  ;;  %p1371_p10 = scmp.lt.s32.totalorder %s1365_s27, %s1912_s14 }
  0x65   : > { %656 = vmatpush.msra.mxu1 %v639_v15  ;;  %v696_v45 = vld [vmem:[%s1728_s12 + $0x60] sm:$0xff]  ;;  %v693_v48 = vld [vmem:[%s1728_s12 + $0x48] sm:$0xff]  ;;  %v691_v54 = vld [vmem:[%s1728_s12 + $0x38] sm:$0xff]  ;;  %p1367_p2 = scmp.ne.s32.totalorder %s1365_s27, %s1366_s29  ;;  %p1372_p13 = scmp.lt.s32.totalorder %s1370_s26, %s1366_s29 }
  0x66   : > { %614 = vmatpush.msra.mxu0 %v595_v12  ;;  %702 = vmatpush.msra.mxu2 %v697_v44  ;;  %v692_v53 = vld [vmem:[%s1728_s12 + $0x40] sm:$0xff]  ;;  %v690_v55 = vld [vmem:[%s1728_s12 + $0x30] sm:$0xff]  ;;  %v689_v56 = vld [vmem:[%s1728_s12 + $0x28] sm:$0xff] }
  0x67   : > { %657 = vmatpush.msra.mxu1 %v638_v17  ;;  %v688_v57 = vld [vmem:[%s1728_s12 + $0x20] sm:$0xff]  ;;  %v687_v58 = vld [vmem:[%s1728_s12 + $0x18] sm:$0xff]  ;;  %v686_v59 = vld [vmem:[%s1728_s12 + $0x10] sm:$0xff]  ;;  %p1368_p4 = pnand %p1367_p2, %p1632_p5  ;;  %p1373_p0 = por %p1372_p13, %p1371_p10 }
  0x68   : > { %615 = vmatpush.msra.mxu0 %v594_v14  ;;  %703 = vmatpush.msra.mxu2 %v696_v45  ;;  %v685_v60 = vld [vmem:[%s1728_s12 + $0x8] sm:$0xff]  ;;  %v684_v61 = vld [vmem:[%s1728_s12] sm:$0xff]  ;;  %v738_v62 = vld [vmem:[#allocation13 + $0x78] sm:$0xff] }
  0x69   : > { %658 = vmatpush.msra.mxu1 %v637_v19  ;;  %v737_v63 = vld [vmem:[#allocation13 + $0x70] sm:$0xff]  ;;  %743 = vmatpush.msra.mxu3 %v738_v62  ;;  %v736_v0 = vld [vmem:[#allocation13 + $0x68] sm:$0xff]  ;;  %v735_v1 = vld [vmem:[#allocation13 + $0x60] sm:$0xff]  ;;  %p1369_p8 = pneg %p1368_p4 }
  0x6a   : > { %616 = vmatpush.msra.mxu0 %v593_v16  ;;  %704 = vmatpush.msra.mxu2 %v695_v46  ;;  %v734_v2 = vld [vmem:[#allocation13 + $0x58] sm:$0xff]  ;;  %v733_v3 = vld [vmem:[#allocation13 + $0x50] sm:$0xff]  ;;  %v732_v4 = vld [vmem:[#allocation13 + $0x48] sm:$0xff] }
  0x6b   : > { %659 = vmatpush.msra.mxu1 %v636_v21  ;;  %744 = vmatpush.msra.mxu3 %v737_v63  ;;  %v731_v5 = vld [vmem:[#allocation13 + $0x40] sm:$0xff]  ;;  %v730_v7 = vld [vmem:[#allocation13 + $0x38] sm:$0xff]  ;;  %v729_v9 = vld [vmem:[#allocation13 + $0x30] sm:$0xff]  ;;  %v721_v21 = vstv %s720_s6  ;;  %p1374_p3 = pnand %p1373_p0, %p1369_p8 }
  0x6c   : > { %617 = vmatpush.msra.mxu0 %v592_v18  ;;  %705 = vmatpush.msra.mxu2 %v694_v47  ;;  %v728_v10 = vld [vmem:[#allocation13 + $0x28] sm:$0xff]  ;;  %v727_v11 = vld [vmem:[#allocation13 + $0x20] sm:$0xff]  ;;  %v726_v12 = vld [vmem:[#allocation13 + $0x18] sm:$0xff] }
  0x6d   : > { %660 = vmatpush.msra.mxu1 %v635_v23  ;;  %745 = vmatpush.msra.mxu3 %v736_v0  ;;  %v725_v15 = vld [vmem:[#allocation13 + $0x10] sm:$0xff]  ;;  %v724_v19 = vld [vmem:[#allocation13 + $0x8] sm:$0xff] }
  0x6e   : > { %618 = vmatpush.msra.mxu0 %v591_v20  ;;  %706 = vmatpush.msra.mxu2 %v693_v48  ;;  %v723_v20 = vld [vmem:[#allocation13] sm:$0xff] }
  0x6f   : > { %661 = vmatpush.msra.mxu1 %v634_v25  ;;  %746 = vmatpush.msra.mxu3 %v735_v1 }
  0x70   : > { %619 = vmatpush.msra.mxu0 %v590_v22  ;;  %707 = vmatpush.msra.mxu2 %v692_v53 }
  0x71   : > { %662 = vmatpush.msra.mxu1 %v633_v29  ;;  %747 = vmatpush.msra.mxu3 %v734_v2 }
  0x72   : > { %620 = vmatpush.msra.mxu0 %v589_v24  ;;  %708 = vmatpush.msra.mxu2 %v691_v54 }
  0x73   : > { %663 = vmatpush.msra.mxu1 %v632_v30  ;;  %748 = vmatpush.msra.mxu3 %v733_v3 }
  0x74   : > { %621 = vmatpush.msra.mxu0 %v588_v26  ;;  %709 = vmatpush.msra.mxu2 %v690_v55 }
  0x75   : > { %664 = vmatpush.msra.mxu1 %v631_v31  ;;  %749 = vmatpush.msra.mxu3 %v732_v4 }
  0x76   : > { %622 = vmatpush.msra.mxu0 %v587_v27  ;;  %710 = vmatpush.msra.mxu2 %v689_v56 }
  0x77   : > { %623 = vmatmul.f32.vlgmr.msra.gmra.mxu0 %v1756_v28  ;;  %665 = vmatpush.msra.mxu1 %v630_v32 }
  0x78   : > { %711 = vmatpush.msra.mxu2 %v688_v57  ;;  %750 = vmatpush.msra.mxu3 %v731_v5 }
  0x7a   : > { %712 = vmatpush.msra.mxu2 %v687_v58  ;;  %751 = vmatpush.msra.mxu3 %v730_v7 }
  0x7c   : > { %713 = vmatpush.msra.mxu2 %v686_v59  ;;  %752 = vmatpush.msra.mxu3 %v729_v9 }
  0x7e   : > { %714 = vmatpush.msra.mxu2 %v685_v60  ;;  %753 = vmatpush.msra.mxu3 %v728_v10 }
  0x80   : > { %715 = vmatpush.msra.mxu2 %v684_v61  ;;  %754 = vmatpush.msra.mxu3 %v727_v11 }
  0x82   : > { %755 = vmatpush.msra.mxu3 %v726_v12 }
  0x84   : > { %756 = vmatpush.msra.mxu3 %v725_v15 }
  0x86   : > { %757 = vmatpush.msra.mxu3 %v724_v19 }
  0x88   : > { %758 = vmatpush.msra.mxu3 %v723_v20 }
  0xf4   : > { %v624_v34 = vpop.f32.mrf.mxu0 }
  0xf5   : > { %v625_v36 = vadd.f32 %v1151_v33, %v624_v34 }
  0xf7   : > { %v628_v37 = vadd.f32 %v627_v35, %v625_v36 }
  0xf9   : > { %v629_v38 = vmul.f32 0.70710677, %v628_v37 }
  0xfb   : > { %666 = vmatmul.f32.vlgmr.msra.gmra.mxu1 %v629_v38 }
 0x178   : > { %v667_v40 = vpop.f32.mrf.mxu1 }
 0x179   : > { %v668_v41 = vadd.f32 %v1152_v39, %v667_v40 }
 0x17b   : > { %670 = vmax.xlane.f32.xlu0 %v668_v41 }
 0x1ee   : > { %v671_v49 = vpop.xlane.xlu0 %670 }
 0x1ef   : > { %v672_v50 = vsub.f32 %v668_v41, %v671_v49 }
 0x1f1   : > { %v673_v51 = vmul.f32 1.442695, %v672_v50 }
 0x1f3   : > { %1154 = vpow2.f32 %v673_v51 }
 0x1f9   : > { %v1155_v52 = vpop.eup %1154 }
 0x1fa   : > { %675 = vadd.xlane.f32.xlu0 %v1155_v52 }
 0x26d   : > { %v676_v6 = vpop.xlane.xlu0 %675 }
 0x26e   : > { %v677_v8 = vmax.f32 %v676_v6, 1e-30 }
 0x270   : > { %1156 = vrcp.f32 %v677_v8 }
 0x276   : > { %v1157_v13 = vpop.eup %1156 }
 0x277   : > { %v679_v14 = vmul.f32 %v1157_v13, %v677_v8 }
 0x279   : > { %v680_v16 = vsub.f32 2.0, %v679_v14 }
 0x27b   : > { %v681_v17 = vmul.f32 %v1157_v13, %v680_v16 }
 0x27d   : > { %v682_v18 = vmul.f32 %v1155_v52, %v681_v17 }
 0x27f   : > { %716 = vmatmul.f32.vlgmr.msra.gmra.mxu2 %v682_v18  ;;  %683 = vst [vmem:[%s582_s2] sm:$0xff] %v682_v18 }
 0x302   : > { %v717_v22 = vpop.f32.mrf.mxu2 }
 0x303   : > { %v722_v23 = vmul.f32 %v721_v21, %v717_v22 }
 0x305   : > { %759 = vmatmul.f32.vlgmr.msra.gmra.mxu3 %v722_v23 }
 0x306   : > { %1377 = shalt.err (!%p1374_p3)
}
 0x307   : > { %1062 = dma.vmem_to_hbm [thread:$0]  (%p1632_p5), %s801_s24, 128, %s803_s19, %s772_s13  }
 0x308   : > { %s1913_s10 = sld [smem:[#allocation39_spill]]  ;;  %s575_s7 = scalar_lea.vmem [#allocation15], %s1711_s8 }
 0x309   : > { %s1914_s2 = sld [smem:[#allocation40_spill]]  ;;  %s785_s30 = sshll.u32 %s575_s7, 4  ;;  %s786_s30 = int_to_ptr.vmem [resolvable:$true] %s785_s30 }
 0x30a   : > { %s767_s23 = scalar_lea.sflag [#allocation6], %s1708_s5 }
 0x30e   : > { %v1153_v24 = vld [vmem:[%s1913_s10] ss:$0 sm:$0xff] }
 0x30f   : > { %s783_s6 = scalar_lea.hbm %s1914_s2, %s1039_s11  ;;  %s1398_s8 = scalar_lea.hbm %s1914_s2, 16 }
 0x310   : > { %s787_s22 = sshll.u32 %s783_s6, 4  ;;  %s788_s22 = int_to_ptr.hbm [resolvable:$true] %s787_s22 }
 0x311   : > { %s1392_s24 = sshra.s32 %s788_s22, 4  ;;  %s1393_s24 = int_to_ptr.hbm [resolvable:$true] %s1392_s24 }
 0x312   : > { %s1394_s19 = scalar_lea.hbm %s1393_s24, 8  ;;  %p1399_p1 = scmp.lt.s32.totalorder %s1393_s24, %s1914_s2 }
 0x313   : > { %p1395_p7 = scmp.ne.s32.totalorder %s1393_s24, %s1394_s19  ;;  %p1400_p2 = scmp.lt.s32.totalorder %s1398_s8, %s1394_s19 }
 0x315   : > { %p1396_p9 = pnand %p1395_p7, %p1632_p5  ;;  %p1401_p4 = por %p1400_p2, %p1399_p1 }
 0x317   : > { %p1397_p12 = pneg %p1396_p9 }
 0x319   : > { %p1402_p8 = pnand %p1401_p4, %p1397_p12 }
 0x388   : > { %v760_v25 = vpop.f32.mrf.mxu3 }
 0x389   : > { %v761_v26 = vadd.f32 %v1153_v24, %v760_v25 }
 0x38b   : > { %v763_v27 = vadd.f32 %v761_v26, %v1756_v28 }
 0x38d   : > { %v764_v29 = vmul.f32 0.70710677, %v763_v27 }
 0x38f   : > { %765 = vst [vmem:[%s575_s7] sm:$0xff] %v764_v29 }
 0x390   : > { %1405 = shalt.err (!%p1402_p8)
}
 0x391   : > { %1061 = dma.vmem_to_hbm [thread:$0]  (%p1632_p5), %s786_s30, 128, %s788_s22, %s767_s23  }
 0x392 PF: > { %s1915_s5 = sld [smem:[#allocation26_spill]]  ;;  %p1086_p10 = pnand %p1017_p11, %p1597_p6 }
 0x394   : > { %p1087_p13 = pneg %p1086_p10 }
 0x398   : > { %s814_s28 = sand.u32 1, %s1915_s5  }
 0x399   : > { %s815_s26 = scalar_lea.sflag [#allocation6], %s814_s28 }
 0x39a   : > { %1453 = dma.done.wait (%p1087_p13), %s815_s26, 128  }
 0x39b   : > { %1455 = vsyncadd (%p1087_p13), %s815_s26, 4294967168  ;;  %s825_s9 = scalar_lea.sflag [#allocation17], %s814_s28 }
 0x39c   : > { %1457 = dma.done.wait (%p1087_p13), %s825_s9, 128  }
 0x39d   : > { %1459 = vsyncadd (%p1087_p13), %s825_s9, 4294967168  ;;  %s46_s25 = sadd.s32 1, %s1482_s25   ;;  %s1917_s18 = sld [smem:[#allocation27_spill]] }
 0x39e   : > { %p43_p0 = scmp.ge.s32.totalorder %s46_s25, 4   ;;  %s1918_s22 = sld [smem:[#allocation33_spill]] }
 0x39f   : > { %s1919_s23 = sld [smem:[#allocation29_spill]]  ;;  %s1921_s21 = smov %s1466_s0 }
 0x3a0   : > { %s1920_s24 = sld [smem:[#allocation31_spill]]  ;;  %45 = sbr.rel (!%p43_p0) target bundleno = 26 (0x1a), region = 166 }
 0x3a3   : > { %s1922_s0 = smov %s1917_s18 }
 0x3a5   :  { %831 = vsyncpa [#allocation5], 1 }
 0x3a6   :  { %833 = vsyncpa [#allocation5 + $0x1], 1 }
 0x3a7   :  { %834 = vsyncpa [#allocation8], 1 }
 0x3a8   :  { %836 = vsyncpa [#allocation8 + $0x1], 1 }
 0x3a9   :  { %837 = vsyncpa [#allocation11], 1 }
 0x3aa   :  { %839 = vsyncpa [#allocation11 + $0x1], 1 }
 0x3ab   :  { %840 = vsyncpa [#allocation14], 1 }
 0x3ac   :  { %841 = vsyncpa [#allocation6], 1 }
 0x3ad   :  { %843 = vsyncpa [#allocation6 + $0x1], 1 }
 0x3ae   :  { %844 = vsyncpa [#allocation17], 1 }
 0x3af   :  { %846 = vsyncpa [#allocation17 + $0x1], 1 }

</bundles_post_ra>
